<compile_context>
chip_gen: v7x
topology: tpu7x:2x2x1
jax: 0.10.0
libtpu: 0.0.40
codegen_flags: <defaults>
</compile_context>

<pallas_src>
import functools

import jax
import jax.numpy as jnp
from jax import lax
from jax.experimental import pallas as pl
from jax.experimental.pallas import tpu as pltpu


def _leaky_relu(x, slope=0.2):
    return jnp.where(x > 0, x, slope * x)


def _encoder_kernel(x_ref, d1_ref, d2_ref, d3_ref, sel_ref, y_ref, p_ref, s_ref,
                    *, C, Nb, H, W, P):
    # x_ref  : (1, 2R, HW)      VMEM  Nb images, rows = channel*Nb + image, row-doubled
    # d1_ref : (C,   R, 1)      VMEM  conv1 circulant weight columns
    # d2_ref : (9*C, R, 1)      VMEM  conv2 circulant weight columns (tap-major)
    # d3_ref : (C,   R, 1)      VMEM  conv3 circulant weight columns
    # sel_ref: (HW, Hp*Wp)      VMEM  0/1 pooling compaction matrix
    # y_ref  : (1, R, HW)       VMEM  residual-block output (lane-dense)
    # p_ref  : (1, R, Hp*Wp)    VMEM  2x2 max-pooled output (lane-dense)
    # s_ref  : (2R, P+HW+P)     VMEM  haloed, row-doubled staging slab
    R = C * Nb
    HW = H * W

    # Zero the lane halos so the dy = +-1 taps of the padded 3x3 conv read 0.
    # (Cheap: two small aligned stores; done every step so "parallel" grid
    #  splitting across cores stays correct.)
    s_ref[:, 0:P] = jnp.zeros((2 * R, P), jnp.float32)
    s_ref[:, P + HW:P + HW + P] = jnp.zeros((2 * R, P), jnp.float32)

    # Hoisted column masks for the dx = +-1 taps (row wrap across flat lanes).
    lane = lax.broadcasted_iota(jnp.int32, (1, HW), 1)
    if (W & (W - 1)) == 0:
        col = jnp.bitwise_and(lane, W - 1)
    else:
        col = lane % W
    col_ok = {-1: col > 0, 1: col < (W - 1)}

    x0 = x_ref[0, 0:R, :].astype(jnp.float32)            # (R, HW) first copy

    # ---- conv1: 1x1 (no bias) + LeakyReLU(0.2) — circulant slab FMAs -------
    h1 = d1_ref[0] * x0
    for k in range(1, C):
        xk = x_ref[0, k * Nb:k * Nb + R, :].astype(jnp.float32)
        h1 = h1 + d1_ref[k] * xk
    h1 = _leaky_relu(h1)

    # Stage h1 doubled along rows (two dense stores) for row-wrapped taps.
    s_ref[0:R, P:P + HW] = h1
    s_ref[R:2 * R, P:P + HW] = h1

    # ---- conv2: 3x3, pad=1 + LeakyReLU — 9 taps x C circulant terms --------
    acc2 = None
    tap = 0
    for dy in (-1, 0, 1):
        for dx in (-1, 0, 1):
            off = P + dy * W + dx
            term = None
            for k in range(C):
                t = s_ref[k * Nb:k * Nb + R, off:off + HW]      # (R, HW)
                contrib = d2_ref[tap * C + k] * t
                term = contrib if term is None else term + contrib
            if dx != 0:                                         # only x-wrap needs a mask
                term = jnp.where(col_ok[dx], term, 0.0)
            acc2 = term if acc2 is None else acc2 + term
            tap += 1
    h2 = _leaky_relu(acc2)

    # ---- conv3: 1x1 + identity residual; single dense y store --------------
    s_ref[0:R, P:P + HW] = h2
    s_ref[R:2 * R, P:P + HW] = h2
    y = x0 + d3_ref[0] * h2
    for k in range(1, C):
        y = y + d3_ref[k] * s_ref[k * Nb:k * Nb + R, P:P + HW]
    y_ref[0] = y.astype(y_ref.dtype)

    # ---- MaxPool2d(2): lane-dense maxes + MXU compaction --------------------
    # (pooled values are taken at even (row, col) lanes only, so the halo /
    #  non-selected lanes never affect the result; the selection matmul picks
    #  exactly one element per output, so f32 accumulation is exact.)
    s_ref[0:R, P:P + HW] = y
    m1 = jnp.maximum(y, s_ref[0:R, P + 1:P + 1 + HW])
    s_ref[0:R, P:P + HW] = m1
    m2 = jnp.maximum(m1, s_ref[0:R, P + W:P + W + HW])
    p = jnp.dot(m2, sel_ref[...], preferred_element_type=jnp.float32)
    p_ref[0] = p.astype(p_ref.dtype)


def _circulant_columns(w, Nb):
    """w: (C, C) with w[ci, co] -> (C, C*Nb, 1): out[k, co*Nb+b] = w[(co+k)%C, co]."""
    C = w.shape[0]
    k_idx = jnp.arange(C)[:, None]
    co_idx = jnp.arange(C)[None, :]
    d = w[(co_idx + k_idx) % C, co_idx]                      # (C, C)
    return jnp.repeat(d, Nb, axis=1)[:, :, None].astype(jnp.float32)


def _circulant_columns_3x3(w2, Nb):
    """w2: (3,3,C,C) [ky,kx,ci,co] -> (9*C, C*Nb, 1):
       out[t*C + k, co*Nb + b] = w2[t//3, t%3, (co+k)%C, co]."""
    C = w2.shape[2]
    w2r = w2.reshape(9, C, C)
    k_idx = jnp.arange(C)[:, None]
    co_idx = jnp.arange(C)[None, :]
    d = w2r[:, (co_idx + k_idx) % C, co_idx]                 # (9, C, C)
    d = jnp.repeat(d, Nb, axis=2)                            # (9, C, C*Nb)
    return d.reshape(9 * C, C * Nb, 1).astype(jnp.float32)


def _pool_select_matrix(H, W):
    """(HW, Hp*Wp) 0/1 matrix selecting flat lane 2*yp*W + 2*xp for output q."""
    Hp, Wp = H // 2, W // 2
    q = jnp.arange(Hp * Wp)
    src = 2 * (q // Wp) * W + 2 * (q % Wp)
    p = jnp.arange(H * W)
    return (p[:, None] == src[None, :]).astype(jnp.float32)


def _pick_images_per_block(N, C):
    """Pack enough images per grid step to fill the 8 sublanes (C*Nb ~ 8)."""
    nb = min(N, max(1, 8 // C))
    while nb > 1 and N % nb != 0:
        nb -= 1
    return nb


@jax.jit
def encoder_forward(x_nchw, w1, w2, w3):
    """x_nchw: (N, C, H, W); w1/w3: (C, C) [ci, co]; w2: (3, 3, C, C) [ky, kx, ci, co].
    Returns (max_pool(y), y) like the PyTorch Encoder."""
    N, C, H, W = x_nchw.shape
    Cm = w1.shape[1]
    assert C == Cm, "identity branch requires in_channel == out_channel"
    assert H % 2 == 0 and W % 2 == 0, "MaxPool2d(2) assumes even H and W"
    HW = H * W
    Hp, Wp = H // 2, W // 2
    P = ((W + 1 + 127) // 128) * 128        # halo width, 128-lane aligned, >= W+1

    Nb = _pick_images_per_block(N, C)
    G = N // Nb
    R = C * Nb

    # Channel-major interleave (row = c*Nb + b), then row-double so the kernel
    # can read row-rotated copies with plain window loads.  Layout plumbing.
    slab = x_nchw.reshape(G, Nb, C, HW).transpose(0, 2, 1, 3).reshape(G, R, HW)
    x3 = jnp.concatenate([slab, slab], axis=1)               # (G, 2R, HW)

    d1 = _circulant_columns(w1, Nb)
    d2 = _circulant_columns_3x3(w2, Nb)
    d3 = _circulant_columns(w3, Nb)
    sel = _pool_select_matrix(H, W)

    kernel = functools.partial(_encoder_kernel, C=C, Nb=Nb, H=H, W=W, P=P)

    y3, p3 = pl.pallas_call(
        kernel,
        out_shape=(
            jax.ShapeDtypeStruct((G, R, HW), x_nchw.dtype),
            jax.ShapeDtypeStruct((G, R, Hp * Wp), x_nchw.dtype),
        ),
        grid_spec=pltpu.PrefetchScalarGridSpec(
            num_scalar_prefetch=0,
            grid=(G,),
            in_specs=[
                pl.BlockSpec((1, 2 * R, HW), lambda g: (g, 0, 0)),
                pl.BlockSpec((C, R, 1), lambda g: (0, 0, 0)),
                pl.BlockSpec((9 * C, R, 1), lambda g: (0, 0, 0)),
                pl.BlockSpec((C, R, 1), lambda g: (0, 0, 0)),
                pl.BlockSpec((HW, Hp * Wp), lambda g: (0, 0)),
            ],
            out_specs=(
                pl.BlockSpec((1, R, HW), lambda g: (g, 0, 0)),
                pl.BlockSpec((1, R, Hp * Wp), lambda g: (g, 0, 0)),
            ),
            scratch_shapes=[pltpu.VMEM((2 * R, P + HW + P), jnp.float32)],
        ),
        compiler_params=pltpu.CompilerParams(
            dimension_semantics=("parallel",),
        ),
    )(x3, d1, d2, d3, sel)

    # Un-interleave back to NCHW (wrapper-side layout plumbing).
    y_full = y3.reshape(G, C, Nb, H, W).transpose(0, 2, 1, 3, 4).reshape(N, C, H, W)
    y_pool = p3.reshape(G, C, Nb, Hp, Wp).transpose(0, 2, 1, 3, 4).reshape(N, C, Hp, Wp)
    return y_pool, y_full


def _reference_forward(x_nchw, w1, w2, w3):
    """Pure-JAX reference matching the PyTorch module (NCHW)."""
    w1_t = jnp.transpose(w1, (1, 0))[:, :, None, None]     # (Cm, Cin, 1, 1)
    w2_t = jnp.transpose(w2, (3, 2, 0, 1))                  # (Cm, Cm, 3, 3)
    w3_t = jnp.transpose(w3, (1, 0))[:, :, None, None]      # (Cm, Cm, 1, 1)
    dn = lax.conv_dimension_numbers(x_nchw.shape, w1_t.shape,
                                    ("NCHW", "OIHW", "NCHW"))

    def conv(x, w, pad):
        return lax.conv_general_dilated(x, w, (1, 1),
                                        [(pad, pad), (pad, pad)],
                                        dimension_numbers=dn)

    h = _leaky_relu(conv(x_nchw, w1_t, 0))
    h = _leaky_relu(conv(h, w2_t, 1))
    h = conv(h, w3_t, 0)
    y = x_nchw + h
    p = lax.reduce_window(y, -jnp.inf, lax.max,
                          (1, 1, 2, 2), (1, 1, 2, 2), "VALID")
    return p, y


if __name__ == "__main__":
    # Small shapes: batch=2, in_channel=out_channel=4, spatial=16x16.
    N, C, H, W = 2, 4, 16, 16

    key = jax.random.PRNGKey(0)
    kx, k1, k2, k3 = jax.random.split(key, 4)

    x_nchw = jax.random.normal(kx, (N, C, H, W), dtype=jnp.float32)
    # Conv weights in matmul-friendly layouts:
    w1 = 0.1 * jax.random.normal(k1, (C, C), dtype=jnp.float32)        # 1x1: (in, out)
    w2 = 0.1 * jax.random.normal(k2, (3, 3, C, C), dtype=jnp.float32)  # 3x3: (ky, kx, in, out)
    w3 = 0.1 * jax.random.normal(k3, (C, C), dtype=jnp.float32)        # 1x1: (in, out)

    pool_out, full_out = encoder_forward(x_nchw, w1, w2, w3)
    jax.block_until_ready((pool_out, full_out))

    pool_ref, full_ref = _reference_forward(x_nchw, w1, w2, w3)

    assert pool_out.shape == (N, C, H // 2, W // 2)
    assert full_out.shape == (N, C, H, W)
    assert jnp.allclose(pool_out, pool_ref, rtol=1e-4, atol=1e-4)
    assert jnp.allclose(full_out, full_ref, rtol=1e-4, atol=1e-4)

    print("KERNEL_OK")
</pallas_src>

<mosaic_0001>
module attributes {stable_mosaic.version = 11 : i64} {
  func.func @_encoder_kernel(%arg0: i32, %arg1: memref<1x16x256xf32, #tpu.memory_space<vmem>>, %arg2: memref<4x8x1xf32, #tpu.memory_space<vmem>>, %arg3: memref<36x8x1xf32, #tpu.memory_space<vmem>>, %arg4: memref<4x8x1xf32, #tpu.memory_space<vmem>>, %arg5: memref<256x64xf32, #tpu.memory_space<vmem>>, %arg6: memref<1x8x256xf32, #tpu.memory_space<vmem>>, %arg7: memref<1x8x64xf32, #tpu.memory_space<vmem>>, %arg8: memref<16x512xf32, #tpu.memory_space<vmem>>) attributes {dimension_semantics = [#tpu.dimension_semantics<parallel>], iteration_bounds = array<i64: 1>, scalar_prefetch = 0 : i64, scratch_operands = 1 : i64, tpu.core_type = #tpu.core_type<tc>, window_params = [{transform_indices = @transform_0, window_bounds = array<i64: 1, 16, 256>}, {pipeline_mode = #tpu.pipeline_mode<synchronous>, transform_indices = @transform_1, window_bounds = array<i64: 4, 8, 1>}, {pipeline_mode = #tpu.pipeline_mode<synchronous>, transform_indices = @transform_2, window_bounds = array<i64: 36, 8, 1>}, {pipeline_mode = #tpu.pipeline_mode<synchronous>, transform_indices = @transform_3, window_bounds = array<i64: 4, 8, 1>}, {pipeline_mode = #tpu.pipeline_mode<synchronous>, transform_indices = @transform_4, window_bounds = array<i64: 256, 64>}, {transform_indices = @transform_5, window_bounds = array<i64: 1, 8, 256>}, {transform_indices = @transform_6, window_bounds = array<i64: 1, 8, 64>}]} {
    %cst = arith.constant 0.000000e+00 : f32
    %0 = vector.broadcast %cst : f32 to vector<16x128xf32>
    %c0 = arith.constant 0 : index
    %c0_0 = arith.constant 0 : index
    %1 = vector.load %arg8[%c0, %c0_0] : memref<16x512xf32, #tpu.memory_space<vmem>>, vector<16x128xf32>
    tpu.vector_store %arg8[%c0, %c0_0], %0 {strides = array<i32>} : memref<16x512xf32, #tpu.memory_space<vmem>>, vector<16x128xf32>,
    %cst_1 = arith.constant 0.000000e+00 : f32
    %2 = vector.broadcast %cst_1 : f32 to vector<16x128xf32>
    %c0_2 = arith.constant 0 : index
    %c384 = arith.constant 384 : index
    %3 = vector.load %arg8[%c0_2, %c384] : memref<16x512xf32, #tpu.memory_space<vmem>>, vector<16x128xf32>
    tpu.vector_store %arg8[%c0_2, %c384], %2 {strides = array<i32>} : memref<16x512xf32, #tpu.memory_space<vmem>>, vector<16x128xf32>,
    %4 = tpu.iota {dimensions = array<i32: 1>} : vector<1x256xi32>
    %c15_i32 = arith.constant 15 : i32
    %5 = vector.broadcast %c15_i32 : i32 to vector<1x256xi32>
    %6 = arith.andi %4, %5 : vector<1x256xi32>
    %c0_i32 = arith.constant 0 : i32
    %7 = vector.broadcast %c0_i32 : i32 to vector<1x256xi32>
    %8 = arith.cmpi sgt, %6, %7 : vector<1x256xi32>
    %c15_i32_3 = arith.constant 15 : i32
    %9 = vector.broadcast %c15_i32_3 : i32 to vector<1x256xi32>
    %10 = arith.cmpi slt, %6, %9 : vector<1x256xi32>
    %c0_4 = arith.constant 0 : index
    %c0_5 = arith.constant 0 : index
    %c0_6 = arith.constant 0 : index
    %11 = vector.load %arg1[%c0_4, %c0_5, %c0_6] : memref<1x16x256xf32, #tpu.memory_space<vmem>>, vector<1x8x256xf32>
    %12 = vector.shape_cast %11 : vector<1x8x256xf32> to vector<8x256xf32>
    %c0_7 = arith.constant 0 : index
    %c0_8 = arith.constant 0 : index
    %c0_9 = arith.constant 0 : index
    %13 = vector.load %arg2[%c0_7, %c0_8, %c0_9] : memref<4x8x1xf32, #tpu.memory_space<vmem>>, vector<1x8x1xf32>
    %14 = vector.shape_cast %13 : vector<1x8x1xf32> to vector<8x1xf32>
    %15 = vector.broadcast %14 : vector<8x1xf32> to vector<8x256xf32>
    %16 = arith.mulf %15, %12 : vector<8x256xf32>
    %c0_10 = arith.constant 0 : index
    %c2 = arith.constant 2 : index
    %c0_11 = arith.constant 0 : index
    %17 = vector.load %arg1[%c0_10, %c2, %c0_11] : memref<1x16x256xf32, #tpu.memory_space<vmem>>, vector<1x8x256xf32>
    %18 = vector.shape_cast %17 : vector<1x8x256xf32> to vector<8x256xf32>
    %c1 = arith.constant 1 : index
    %c0_12 = arith.constant 0 : index
    %c0_13 = arith.constant 0 : index
    %19 = vector.load %arg2[%c1, %c0_12, %c0_13] : memref<4x8x1xf32, #tpu.memory_space<vmem>>, vector<1x8x1xf32>
    %20 = vector.shape_cast %19 : vector<1x8x1xf32> to vector<8x1xf32>
    %21 = vector.broadcast %20 : vector<8x1xf32> to vector<8x256xf32>
    %22 = arith.mulf %21, %18 : vector<8x256xf32>
    %23 = arith.addf %16, %22 : vector<8x256xf32>
    %c0_14 = arith.constant 0 : index
    %c4 = arith.constant 4 : index
    %c0_15 = arith.constant 0 : index
    %24 = vector.load %arg1[%c0_14, %c4, %c0_15] : memref<1x16x256xf32, #tpu.memory_space<vmem>>, vector<1x8x256xf32>
    %25 = vector.shape_cast %24 : vector<1x8x256xf32> to vector<8x256xf32>
    %c2_16 = arith.constant 2 : index
    %c0_17 = arith.constant 0 : index
    %c0_18 = arith.constant 0 : index
    %26 = vector.load %arg2[%c2_16, %c0_17, %c0_18] : memref<4x8x1xf32, #tpu.memory_space<vmem>>, vector<1x8x1xf32>
    %27 = vector.shape_cast %26 : vector<1x8x1xf32> to vector<8x1xf32>
    %28 = vector.broadcast %27 : vector<8x1xf32> to vector<8x256xf32>
    %29 = arith.mulf %28, %25 : vector<8x256xf32>
    %30 = arith.addf %23, %29 : vector<8x256xf32>
    %c0_19 = arith.constant 0 : index
    %c6 = arith.constant 6 : index
    %c0_20 = arith.constant 0 : index
    %31 = vector.load %arg1[%c0_19, %c6, %c0_20] : memref<1x16x256xf32, #tpu.memory_space<vmem>>, vector<1x8x256xf32>
    %32 = vector.shape_cast %31 : vector<1x8x256xf32> to vector<8x256xf32>
    %c3 = arith.constant 3 : index
    %c0_21 = arith.constant 0 : index
    %c0_22 = arith.constant 0 : index
    %33 = vector.load %arg2[%c3, %c0_21, %c0_22] : memref<4x8x1xf32, #tpu.memory_space<vmem>>, vector<1x8x1xf32>
    %34 = vector.shape_cast %33 : vector<1x8x1xf32> to vector<8x1xf32>
    %35 = vector.broadcast %34 : vector<8x1xf32> to vector<8x256xf32>
    %36 = arith.mulf %35, %32 : vector<8x256xf32>
    %37 = arith.addf %30, %36 : vector<8x256xf32>
    %cst_23 = arith.constant 0.000000e+00 : f32
    %38 = vector.broadcast %cst_23 : f32 to vector<8x256xf32>
    %39 = arith.cmpf ogt, %37, %38 : vector<8x256xf32>
    %cst_24 = arith.constant 2.000000e-01 : f32
    %40 = vector.broadcast %cst_24 : f32 to vector<8x256xf32>
    %41 = arith.mulf %40, %37 : vector<8x256xf32>
    %42 = arith.select %39, %37, %41 : vector<8x256xi1>, vector<8x256xf32>
    %c0_25 = arith.constant 0 : index
    %c128 = arith.constant 128 : index
    %43 = vector.load %arg8[%c0_25, %c128] : memref<16x512xf32, #tpu.memory_space<vmem>>, vector<8x256xf32>
    tpu.vector_store %arg8[%c0_25, %c128], %42 {strides = array<i32>} : memref<16x512xf32, #tpu.memory_space<vmem>>, vector<8x256xf32>,
    %c8 = arith.constant 8 : index
    %c128_26 = arith.constant 128 : index
    %44 = vector.load %arg8[%c8, %c128_26] : memref<16x512xf32, #tpu.memory_space<vmem>>, vector<8x256xf32>
    tpu.vector_store %arg8[%c8, %c128_26], %42 {strides = array<i32>} : memref<16x512xf32, #tpu.memory_space<vmem>>, vector<8x256xf32>,
    %c0_27 = arith.constant 0 : index
    %c111 = arith.constant 111 : index
    %45 = vector.load %arg8[%c0_27, %c111] : memref<16x512xf32, #tpu.memory_space<vmem>>, vector<8x256xf32>
    %c0_28 = arith.constant 0 : index
    %c0_29 = arith.constant 0 : index
    %c0_30 = arith.constant 0 : index
    %46 = vector.load %arg3[%c0_28, %c0_29, %c0_30] : memref<36x8x1xf32, #tpu.memory_space<vmem>>, vector<1x8x1xf32>
    %47 = vector.shape_cast %46 : vector<1x8x1xf32> to vector<8x1xf32>
    %48 = vector.broadcast %47 : vector<8x1xf32> to vector<8x256xf32>
    %49 = arith.mulf %48, %45 : vector<8x256xf32>
    %c2_31 = arith.constant 2 : index
    %c111_32 = arith.constant 111 : index
    %50 = vector.load %arg8[%c2_31, %c111_32] : memref<16x512xf32, #tpu.memory_space<vmem>>, vector<8x256xf32>
    %c1_33 = arith.constant 1 : index
    %c0_34 = arith.constant 0 : index
    %c0_35 = arith.constant 0 : index
    %51 = vector.load %arg3[%c1_33, %c0_34, %c0_35] : memref<36x8x1xf32, #tpu.memory_space<vmem>>, vector<1x8x1xf32>
    %52 = vector.shape_cast %51 : vector<1x8x1xf32> to vector<8x1xf32>
    %53 = vector.broadcast %52 : vector<8x1xf32> to vector<8x256xf32>
    %54 = arith.mulf %53, %50 : vector<8x256xf32>
    %55 = arith.addf %49, %54 : vector<8x256xf32>
    %c4_36 = arith.constant 4 : index
    %c111_37 = arith.constant 111 : index
    %56 = vector.load %arg8[%c4_36, %c111_37] : memref<16x512xf32, #tpu.memory_space<vmem>>, vector<8x256xf32>
    %c2_38 = arith.constant 2 : index
    %c0_39 = arith.constant 0 : index
    %c0_40 = arith.constant 0 : index
    %57 = vector.load %arg3[%c2_38, %c0_39, %c0_40] : memref<36x8x1xf32, #tpu.memory_space<vmem>>, vector<1x8x1xf32>
    %58 = vector.shape_cast %57 : vector<1x8x1xf32> to vector<8x1xf32>
    %59 = vector.broadcast %58 : vector<8x1xf32> to vector<8x256xf32>
    %60 = arith.mulf %59, %56 : vector<8x256xf32>
    %61 = arith.addf %55, %60 : vector<8x256xf32>
    %c6_41 = arith.constant 6 : index
    %c111_42 = arith.constant 111 : index
    %62 = vector.load %arg8[%c6_41, %c111_42] : memref<16x512xf32, #tpu.memory_space<vmem>>, vector<8x256xf32>
    %c3_43 = arith.constant 3 : index
    %c0_44 = arith.constant 0 : index
    %c0_45 = arith.constant 0 : index
    %63 = vector.load %arg3[%c3_43, %c0_44, %c0_45] : memref<36x8x1xf32, #tpu.memory_space<vmem>>, vector<1x8x1xf32>
    %64 = vector.shape_cast %63 : vector<1x8x1xf32> to vector<8x1xf32>
    %65 = vector.broadcast %64 : vector<8x1xf32> to vector<8x256xf32>
    %66 = arith.mulf %65, %62 : vector<8x256xf32>
    %67 = arith.addf %61, %66 : vector<8x256xf32>
    %cst_46 = arith.constant 0.000000e+00 : f32
    %68 = vector.shape_cast %8 : vector<1x256xi1> to vector<1x256xi1>
    %69 = vector.broadcast %68 : vector<1x256xi1> to vector<8x256xi1>
    %70 = vector.broadcast %cst_46 : f32 to vector<8x256xf32>
    %71 = arith.select %69, %67, %70 : vector<8x256xi1>, vector<8x256xf32>
    %c0_47 = arith.constant 0 : index
    %c112 = arith.constant 112 : index
    %72 = vector.load %arg8[%c0_47, %c112] : memref<16x512xf32, #tpu.memory_space<vmem>>, vector<8x256xf32>
    %c4_48 = arith.constant 4 : index
    %c0_49 = arith.constant 0 : index
    %c0_50 = arith.constant 0 : index
    %73 = vector.load %arg3[%c4_48, %c0_49, %c0_50] : memref<36x8x1xf32, #tpu.memory_space<vmem>>, vector<1x8x1xf32>
    %74 = vector.shape_cast %73 : vector<1x8x1xf32> to vector<8x1xf32>
    %75 = vector.broadcast %74 : vector<8x1xf32> to vector<8x256xf32>
    %76 = arith.mulf %75, %72 : vector<8x256xf32>
    %c2_51 = arith.constant 2 : index
    %c112_52 = arith.constant 112 : index
    %77 = vector.load %arg8[%c2_51, %c112_52] : memref<16x512xf32, #tpu.memory_space<vmem>>, vector<8x256xf32>
    %c5 = arith.constant 5 : index
    %c0_53 = arith.constant 0 : index
    %c0_54 = arith.constant 0 : index
    %78 = vector.load %arg3[%c5, %c0_53, %c0_54] : memref<36x8x1xf32, #tpu.memory_space<vmem>>, vector<1x8x1xf32>
    %79 = vector.shape_cast %78 : vector<1x8x1xf32> to vector<8x1xf32>
    %80 = vector.broadcast %79 : vector<8x1xf32> to vector<8x256xf32>
    %81 = arith.mulf %80, %77 : vector<8x256xf32>
    %82 = arith.addf %76, %81 : vector<8x256xf32>
    %c4_55 = arith.constant 4 : index
    %c112_56 = arith.constant 112 : index
    %83 = vector.load %arg8[%c4_55, %c112_56] : memref<16x512xf32, #tpu.memory_space<vmem>>, vector<8x256xf32>
    %c6_57 = arith.constant 6 : index
    %c0_58 = arith.constant 0 : index
    %c0_59 = arith.constant 0 : index
    %84 = vector.load %arg3[%c6_57, %c0_58, %c0_59] : memref<36x8x1xf32, #tpu.memory_space<vmem>>, vector<1x8x1xf32>
    %85 = vector.shape_cast %84 : vector<1x8x1xf32> to vector<8x1xf32>
    %86 = vector.broadcast %85 : vector<8x1xf32> to vector<8x256xf32>
    %87 = arith.mulf %86, %83 : vector<8x256xf32>
    %88 = arith.addf %82, %87 : vector<8x256xf32>
    %c6_60 = arith.constant 6 : index
    %c112_61 = arith.constant 112 : index
    %89 = vector.load %arg8[%c6_60, %c112_61] : memref<16x512xf32, #tpu.memory_space<vmem>>, vector<8x256xf32>
    %c7 = arith.constant 7 : index
    %c0_62 = arith.constant 0 : index
    %c0_63 = arith.constant 0 : index
    %90 = vector.load %arg3[%c7, %c0_62, %c0_63] : memref<36x8x1xf32, #tpu.memory_space<vmem>>, vector<1x8x1xf32>
    %91 = vector.shape_cast %90 : vector<1x8x1xf32> to vector<8x1xf32>
    %92 = vector.broadcast %91 : vector<8x1xf32> to vector<8x256xf32>
    %93 = arith.mulf %92, %89 : vector<8x256xf32>
    %94 = arith.addf %88, %93 : vector<8x256xf32>
    %95 = arith.addf %71, %94 : vector<8x256xf32>
    %c0_64 = arith.constant 0 : index
    %c113 = arith.constant 113 : index
    %96 = vector.load %arg8[%c0_64, %c113] : memref<16x512xf32, #tpu.memory_space<vmem>>, vector<8x256xf32>
    %c8_65 = arith.constant 8 : index
    %c0_66 = arith.constant 0 : index
    %c0_67 = arith.constant 0 : index
    %97 = vector.load %arg3[%c8_65, %c0_66, %c0_67] : memref<36x8x1xf32, #tpu.memory_space<vmem>>, vector<1x8x1xf32>
    %98 = vector.shape_cast %97 : vector<1x8x1xf32> to vector<8x1xf32>
    %99 = vector.broadcast %98 : vector<8x1xf32> to vector<8x256xf32>
    %100 = arith.mulf %99, %96 : vector<8x256xf32>
    %c2_68 = arith.constant 2 : index
    %c113_69 = arith.constant 113 : index
    %101 = vector.load %arg8[%c2_68, %c113_69] : memref<16x512xf32, #tpu.memory_space<vmem>>, vector<8x256xf32>
    %c9 = arith.constant 9 : index
    %c0_70 = arith.constant 0 : index
    %c0_71 = arith.constant 0 : index
    %102 = vector.load %arg3[%c9, %c0_70, %c0_71] : memref<36x8x1xf32, #tpu.memory_space<vmem>>, vector<1x8x1xf32>
    %103 = vector.shape_cast %102 : vector<1x8x1xf32> to vector<8x1xf32>
    %104 = vector.broadcast %103 : vector<8x1xf32> to vector<8x256xf32>
    %105 = arith.mulf %104, %101 : vector<8x256xf32>
    %106 = arith.addf %100, %105 : vector<8x256xf32>
    %c4_72 = arith.constant 4 : index
    %c113_73 = arith.constant 113 : index
    %107 = vector.load %arg8[%c4_72, %c113_73] : memref<16x512xf32, #tpu.memory_space<vmem>>, vector<8x256xf32>
    %c10 = arith.constant 10 : index
    %c0_74 = arith.constant 0 : index
    %c0_75 = arith.constant 0 : index
    %108 = vector.load %arg3[%c10, %c0_74, %c0_75] : memref<36x8x1xf32, #tpu.memory_space<vmem>>, vector<1x8x1xf32>
    %109 = vector.shape_cast %108 : vector<1x8x1xf32> to vector<8x1xf32>
    %110 = vector.broadcast %109 : vector<8x1xf32> to vector<8x256xf32>
    %111 = arith.mulf %110, %107 : vector<8x256xf32>
    %112 = arith.addf %106, %111 : vector<8x256xf32>
    %c6_76 = arith.constant 6 : index
    %c113_77 = arith.constant 113 : index
    %113 = vector.load %arg8[%c6_76, %c113_77] : memref<16x512xf32, #tpu.memory_space<vmem>>, vector<8x256xf32>
    %c11 = arith.constant 11 : index
    %c0_78 = arith.constant 0 : index
    %c0_79 = arith.constant 0 : index
    %114 = vector.load %arg3[%c11, %c0_78, %c0_79] : memref<36x8x1xf32, #tpu.memory_space<vmem>>, vector<1x8x1xf32>
    %115 = vector.shape_cast %114 : vector<1x8x1xf32> to vector<8x1xf32>
    %116 = vector.broadcast %115 : vector<8x1xf32> to vector<8x256xf32>
    %117 = arith.mulf %116, %113 : vector<8x256xf32>
    %118 = arith.addf %112, %117 : vector<8x256xf32>
    %cst_80 = arith.constant 0.000000e+00 : f32
    %119 = vector.shape_cast %10 : vector<1x256xi1> to vector<1x256xi1>
    %120 = vector.broadcast %119 : vector<1x256xi1> to vector<8x256xi1>
    %121 = vector.broadcast %cst_80 : f32 to vector<8x256xf32>
    %122 = arith.select %120, %118, %121 : vector<8x256xi1>, vector<8x256xf32>
    %123 = arith.addf %95, %122 : vector<8x256xf32>
    %c0_81 = arith.constant 0 : index
    %c127 = arith.constant 127 : index
    %124 = vector.load %arg8[%c0_81, %c127] : memref<16x512xf32, #tpu.memory_space<vmem>>, vector<8x256xf32>
    %c12 = arith.constant 12 : index
    %c0_82 = arith.constant 0 : index
    %c0_83 = arith.constant 0 : index
    %125 = vector.load %arg3[%c12, %c0_82, %c0_83] : memref<36x8x1xf32, #tpu.memory_space<vmem>>, vector<1x8x1xf32>
    %126 = vector.shape_cast %125 : vector<1x8x1xf32> to vector<8x1xf32>
    %127 = vector.broadcast %126 : vector<8x1xf32> to vector<8x256xf32>
    %128 = arith.mulf %127, %124 : vector<8x256xf32>
    %c2_84 = arith.constant 2 : index
    %c127_85 = arith.constant 127 : index
    %129 = vector.load %arg8[%c2_84, %c127_85] : memref<16x512xf32, #tpu.memory_space<vmem>>, vector<8x256xf32>
    %c13 = arith.constant 13 : index
    %c0_86 = arith.constant 0 : index
    %c0_87 = arith.constant 0 : index
    %130 = vector.load %arg3[%c13, %c0_86, %c0_87] : memref<36x8x1xf32, #tpu.memory_space<vmem>>, vector<1x8x1xf32>
    %131 = vector.shape_cast %130 : vector<1x8x1xf32> to vector<8x1xf32>
    %132 = vector.broadcast %131 : vector<8x1xf32> to vector<8x256xf32>
    %133 = arith.mulf %132, %129 : vector<8x256xf32>
    %134 = arith.addf %128, %133 : vector<8x256xf32>
    %c4_88 = arith.constant 4 : index
    %c127_89 = arith.constant 127 : index
    %135 = vector.load %arg8[%c4_88, %c127_89] : memref<16x512xf32, #tpu.memory_space<vmem>>, vector<8x256xf32>
    %c14 = arith.constant 14 : index
    %c0_90 = arith.constant 0 : index
    %c0_91 = arith.constant 0 : index
    %136 = vector.load %arg3[%c14, %c0_90, %c0_91] : memref<36x8x1xf32, #tpu.memory_space<vmem>>, vector<1x8x1xf32>
    %137 = vector.shape_cast %136 : vector<1x8x1xf32> to vector<8x1xf32>
    %138 = vector.broadcast %137 : vector<8x1xf32> to vector<8x256xf32>
    %139 = arith.mulf %138, %135 : vector<8x256xf32>
    %140 = arith.addf %134, %139 : vector<8x256xf32>
    %c6_92 = arith.constant 6 : index
    %c127_93 = arith.constant 127 : index
    %141 = vector.load %arg8[%c6_92, %c127_93] : memref<16x512xf32, #tpu.memory_space<vmem>>, vector<8x256xf32>
    %c15 = arith.constant 15 : index
    %c0_94 = arith.constant 0 : index
    %c0_95 = arith.constant 0 : index
    %142 = vector.load %arg3[%c15, %c0_94, %c0_95] : memref<36x8x1xf32, #tpu.memory_space<vmem>>, vector<1x8x1xf32>
    %143 = vector.shape_cast %142 : vector<1x8x1xf32> to vector<8x1xf32>
    %144 = vector.broadcast %143 : vector<8x1xf32> to vector<8x256xf32>
    %145 = arith.mulf %144, %141 : vector<8x256xf32>
    %146 = arith.addf %140, %145 : vector<8x256xf32>
    %cst_96 = arith.constant 0.000000e+00 : f32
    %147 = vector.shape_cast %8 : vector<1x256xi1> to vector<1x256xi1>
    %148 = vector.broadcast %147 : vector<1x256xi1> to vector<8x256xi1>
    %149 = vector.broadcast %cst_96 : f32 to vector<8x256xf32>
    %150 = arith.select %148, %146, %149 : vector<8x256xi1>, vector<8x256xf32>
    %151 = arith.addf %123, %150 : vector<8x256xf32>
    %c0_97 = arith.constant 0 : index
    %c128_98 = arith.constant 128 : index
    %152 = vector.load %arg8[%c0_97, %c128_98] : memref<16x512xf32, #tpu.memory_space<vmem>>, vector<8x256xf32>
    %c16 = arith.constant 16 : index
    %c0_99 = arith.constant 0 : index
    %c0_100 = arith.constant 0 : index
    %153 = vector.load %arg3[%c16, %c0_99, %c0_100] : memref<36x8x1xf32, #tpu.memory_space<vmem>>, vector<1x8x1xf32>
    %154 = vector.shape_cast %153 : vector<1x8x1xf32> to vector<8x1xf32>
    %155 = vector.broadcast %154 : vector<8x1xf32> to vector<8x256xf32>
    %156 = arith.mulf %155, %152 : vector<8x256xf32>
    %c2_101 = arith.constant 2 : index
    %c128_102 = arith.constant 128 : index
    %157 = vector.load %arg8[%c2_101, %c128_102] : memref<16x512xf32, #tpu.memory_space<vmem>>, vector<8x256xf32>
    %c17 = arith.constant 17 : index
    %c0_103 = arith.constant 0 : index
    %c0_104 = arith.constant 0 : index
    %158 = vector.load %arg3[%c17, %c0_103, %c0_104] : memref<36x8x1xf32, #tpu.memory_space<vmem>>, vector<1x8x1xf32>
    %159 = vector.shape_cast %158 : vector<1x8x1xf32> to vector<8x1xf32>
    %160 = vector.broadcast %159 : vector<8x1xf32> to vector<8x256xf32>
    %161 = arith.mulf %160, %157 : vector<8x256xf32>
    %162 = arith.addf %156, %161 : vector<8x256xf32>
    %c4_105 = arith.constant 4 : index
    %c128_106 = arith.constant 128 : index
    %163 = vector.load %arg8[%c4_105, %c128_106] : memref<16x512xf32, #tpu.memory_space<vmem>>, vector<8x256xf32>
    %c18 = arith.constant 18 : index
    %c0_107 = arith.constant 0 : index
    %c0_108 = arith.constant 0 : index
    %164 = vector.load %arg3[%c18, %c0_107, %c0_108] : memref<36x8x1xf32, #tpu.memory_space<vmem>>, vector<1x8x1xf32>
    %165 = vector.shape_cast %164 : vector<1x8x1xf32> to vector<8x1xf32>
    %166 = vector.broadcast %165 : vector<8x1xf32> to vector<8x256xf32>
    %167 = arith.mulf %166, %163 : vector<8x256xf32>
    %168 = arith.addf %162, %167 : vector<8x256xf32>
    %c6_109 = arith.constant 6 : index
    %c128_110 = arith.constant 128 : index
    %169 = vector.load %arg8[%c6_109, %c128_110] : memref<16x512xf32, #tpu.memory_space<vmem>>, vector<8x256xf32>
    %c19 = arith.constant 19 : index
    %c0_111 = arith.constant 0 : index
    %c0_112 = arith.constant 0 : index
    %170 = vector.load %arg3[%c19, %c0_111, %c0_112] : memref<36x8x1xf32, #tpu.memory_space<vmem>>, vector<1x8x1xf32>
    %171 = vector.shape_cast %170 : vector<1x8x1xf32> to vector<8x1xf32>
    %172 = vector.broadcast %171 : vector<8x1xf32> to vector<8x256xf32>
    %173 = arith.mulf %172, %169 : vector<8x256xf32>
    %174 = arith.addf %168, %173 : vector<8x256xf32>
    %175 = arith.addf %151, %174 : vector<8x256xf32>
    %c0_113 = arith.constant 0 : index
    %c129 = arith.constant 129 : index
    %176 = vector.load %arg8[%c0_113, %c129] : memref<16x512xf32, #tpu.memory_space<vmem>>, vector<8x256xf32>
    %c20 = arith.constant 20 : index
    %c0_114 = arith.constant 0 : index
    %c0_115 = arith.constant 0 : index
    %177 = vector.load %arg3[%c20, %c0_114, %c0_115] : memref<36x8x1xf32, #tpu.memory_space<vmem>>, vector<1x8x1xf32>
    %178 = vector.shape_cast %177 : vector<1x8x1xf32> to vector<8x1xf32>
    %179 = vector.broadcast %178 : vector<8x1xf32> to vector<8x256xf32>
    %180 = arith.mulf %179, %176 : vector<8x256xf32>
    %c2_116 = arith.constant 2 : index
    %c129_117 = arith.constant 129 : index
    %181 = vector.load %arg8[%c2_116, %c129_117] : memref<16x512xf32, #tpu.memory_space<vmem>>, vector<8x256xf32>
    %c21 = arith.constant 21 : index
    %c0_118 = arith.constant 0 : index
    %c0_119 = arith.constant 0 : index
    %182 = vector.load %arg3[%c21, %c0_118, %c0_119] : memref<36x8x1xf32, #tpu.memory_space<vmem>>, vector<1x8x1xf32>
    %183 = vector.shape_cast %182 : vector<1x8x1xf32> to vector<8x1xf32>
    %184 = vector.broadcast %183 : vector<8x1xf32> to vector<8x256xf32>
    %185 = arith.mulf %184, %181 : vector<8x256xf32>
    %186 = arith.addf %180, %185 : vector<8x256xf32>
    %c4_120 = arith.constant 4 : index
    %c129_121 = arith.constant 129 : index
    %187 = vector.load %arg8[%c4_120, %c129_121] : memref<16x512xf32, #tpu.memory_space<vmem>>, vector<8x256xf32>
    %c22 = arith.constant 22 : index
    %c0_122 = arith.constant 0 : index
    %c0_123 = arith.constant 0 : index
    %188 = vector.load %arg3[%c22, %c0_122, %c0_123] : memref<36x8x1xf32, #tpu.memory_space<vmem>>, vector<1x8x1xf32>
    %189 = vector.shape_cast %188 : vector<1x8x1xf32> to vector<8x1xf32>
    %190 = vector.broadcast %189 : vector<8x1xf32> to vector<8x256xf32>
    %191 = arith.mulf %190, %187 : vector<8x256xf32>
    %192 = arith.addf %186, %191 : vector<8x256xf32>
    %c6_124 = arith.constant 6 : index
    %c129_125 = arith.constant 129 : index
    %193 = vector.load %arg8[%c6_124, %c129_125] : memref<16x512xf32, #tpu.memory_space<vmem>>, vector<8x256xf32>
    %c23 = arith.constant 23 : index
    %c0_126 = arith.constant 0 : index
    %c0_127 = arith.constant 0 : index
    %194 = vector.load %arg3[%c23, %c0_126, %c0_127] : memref<36x8x1xf32, #tpu.memory_space<vmem>>, vector<1x8x1xf32>
    %195 = vector.shape_cast %194 : vector<1x8x1xf32> to vector<8x1xf32>
    %196 = vector.broadcast %195 : vector<8x1xf32> to vector<8x256xf32>
    %197 = arith.mulf %196, %193 : vector<8x256xf32>
    %198 = arith.addf %192, %197 : vector<8x256xf32>
    %cst_128 = arith.constant 0.000000e+00 : f32
    %199 = vector.shape_cast %10 : vector<1x256xi1> to vector<1x256xi1>
    %200 = vector.broadcast %199 : vector<1x256xi1> to vector<8x256xi1>
    %201 = vector.broadcast %cst_128 : f32 to vector<8x256xf32>
    %202 = arith.select %200, %198, %201 : vector<8x256xi1>, vector<8x256xf32>
    %203 = arith.addf %175, %202 : vector<8x256xf32>
    %c0_129 = arith.constant 0 : index
    %c143 = arith.constant 143 : index
    %204 = vector.load %arg8[%c0_129, %c143] : memref<16x512xf32, #tpu.memory_space<vmem>>, vector<8x256xf32>
    %c24 = arith.constant 24 : index
    %c0_130 = arith.constant 0 : index
    %c0_131 = arith.constant 0 : index
    %205 = vector.load %arg3[%c24, %c0_130, %c0_131] : memref<36x8x1xf32, #tpu.memory_space<vmem>>, vector<1x8x1xf32>
    %206 = vector.shape_cast %205 : vector<1x8x1xf32> to vector<8x1xf32>
    %207 = vector.broadcast %206 : vector<8x1xf32> to vector<8x256xf32>
    %208 = arith.mulf %207, %204 : vector<8x256xf32>
    %c2_132 = arith.constant 2 : index
    %c143_133 = arith.constant 143 : index
    %209 = vector.load %arg8[%c2_132, %c143_133] : memref<16x512xf32, #tpu.memory_space<vmem>>, vector<8x256xf32>
    %c25 = arith.constant 25 : index
    %c0_134 = arith.constant 0 : index
    %c0_135 = arith.constant 0 : index
    %210 = vector.load %arg3[%c25, %c0_134, %c0_135] : memref<36x8x1xf32, #tpu.memory_space<vmem>>, vector<1x8x1xf32>
    %211 = vector.shape_cast %210 : vector<1x8x1xf32> to vector<8x1xf32>
    %212 = vector.broadcast %211 : vector<8x1xf32> to vector<8x256xf32>
    %213 = arith.mulf %212, %209 : vector<8x256xf32>
    %214 = arith.addf %208, %213 : vector<8x256xf32>
    %c4_136 = arith.constant 4 : index
    %c143_137 = arith.constant 143 : index
    %215 = vector.load %arg8[%c4_136, %c143_137] : memref<16x512xf32, #tpu.memory_space<vmem>>, vector<8x256xf32>
    %c26 = arith.constant 26 : index
    %c0_138 = arith.constant 0 : index
    %c0_139 = arith.constant 0 : index
    %216 = vector.load %arg3[%c26, %c0_138, %c0_139] : memref<36x8x1xf32, #tpu.memory_space<vmem>>, vector<1x8x1xf32>
    %217 = vector.shape_cast %216 : vector<1x8x1xf32> to vector<8x1xf32>
    %218 = vector.broadcast %217 : vector<8x1xf32> to vector<8x256xf32>
    %219 = arith.mulf %218, %215 : vector<8x256xf32>
    %220 = arith.addf %214, %219 : vector<8x256xf32>
    %c6_140 = arith.constant 6 : index
    %c143_141 = arith.constant 143 : index
    %221 = vector.load %arg8[%c6_140, %c143_141] : memref<16x512xf32, #tpu.memory_space<vmem>>, vector<8x256xf32>
    %c27 = arith.constant 27 : index
    %c0_142 = arith.constant 0 : index
    %c0_143 = arith.constant 0 : index
    %222 = vector.load %arg3[%c27, %c0_142, %c0_143] : memref<36x8x1xf32, #tpu.memory_space<vmem>>, vector<1x8x1xf32>
    %223 = vector.shape_cast %222 : vector<1x8x1xf32> to vector<8x1xf32>
    %224 = vector.broadcast %223 : vector<8x1xf32> to vector<8x256xf32>
    %225 = arith.mulf %224, %221 : vector<8x256xf32>
    %226 = arith.addf %220, %225 : vector<8x256xf32>
    %cst_144 = arith.constant 0.000000e+00 : f32
    %227 = vector.shape_cast %8 : vector<1x256xi1> to vector<1x256xi1>
    %228 = vector.broadcast %227 : vector<1x256xi1> to vector<8x256xi1>
    %229 = vector.broadcast %cst_144 : f32 to vector<8x256xf32>
    %230 = arith.select %228, %226, %229 : vector<8x256xi1>, vector<8x256xf32>
    %231 = arith.addf %203, %230 : vector<8x256xf32>
    %c0_145 = arith.constant 0 : index
    %c144 = arith.constant 144 : index
    %232 = vector.load %arg8[%c0_145, %c144] : memref<16x512xf32, #tpu.memory_space<vmem>>, vector<8x256xf32>
    %c28 = arith.constant 28 : index
    %c0_146 = arith.constant 0 : index
    %c0_147 = arith.constant 0 : index
    %233 = vector.load %arg3[%c28, %c0_146, %c0_147] : memref<36x8x1xf32, #tpu.memory_space<vmem>>, vector<1x8x1xf32>
    %234 = vector.shape_cast %233 : vector<1x8x1xf32> to vector<8x1xf32>
    %235 = vector.broadcast %234 : vector<8x1xf32> to vector<8x256xf32>
    %236 = arith.mulf %235, %232 : vector<8x256xf32>
    %c2_148 = arith.constant 2 : index
    %c144_149 = arith.constant 144 : index
    %237 = vector.load %arg8[%c2_148, %c144_149] : memref<16x512xf32, #tpu.memory_space<vmem>>, vector<8x256xf32>
    %c29 = arith.constant 29 : index
    %c0_150 = arith.constant 0 : index
    %c0_151 = arith.constant 0 : index
    %238 = vector.load %arg3[%c29, %c0_150, %c0_151] : memref<36x8x1xf32, #tpu.memory_space<vmem>>, vector<1x8x1xf32>
    %239 = vector.shape_cast %238 : vector<1x8x1xf32> to vector<8x1xf32>
    %240 = vector.broadcast %239 : vector<8x1xf32> to vector<8x256xf32>
    %241 = arith.mulf %240, %237 : vector<8x256xf32>
    %242 = arith.addf %236, %241 : vector<8x256xf32>
    %c4_152 = arith.constant 4 : index
    %c144_153 = arith.constant 144 : index
    %243 = vector.load %arg8[%c4_152, %c144_153] : memref<16x512xf32, #tpu.memory_space<vmem>>, vector<8x256xf32>
    %c30 = arith.constant 30 : index
    %c0_154 = arith.constant 0 : index
    %c0_155 = arith.constant 0 : index
    %244 = vector.load %arg3[%c30, %c0_154, %c0_155] : memref<36x8x1xf32, #tpu.memory_space<vmem>>, vector<1x8x1xf32>
    %245 = vector.shape_cast %244 : vector<1x8x1xf32> to vector<8x1xf32>
    %246 = vector.broadcast %245 : vector<8x1xf32> to vector<8x256xf32>
    %247 = arith.mulf %246, %243 : vector<8x256xf32>
    %248 = arith.addf %242, %247 : vector<8x256xf32>
    %c6_156 = arith.constant 6 : index
    %c144_157 = arith.constant 144 : index
    %249 = vector.load %arg8[%c6_156, %c144_157] : memref<16x512xf32, #tpu.memory_space<vmem>>, vector<8x256xf32>
    %c31 = arith.constant 31 : index
    %c0_158 = arith.constant 0 : index
    %c0_159 = arith.constant 0 : index
    %250 = vector.load %arg3[%c31, %c0_158, %c0_159] : memref<36x8x1xf32, #tpu.memory_space<vmem>>, vector<1x8x1xf32>
    %251 = vector.shape_cast %250 : vector<1x8x1xf32> to vector<8x1xf32>
    %252 = vector.broadcast %251 : vector<8x1xf32> to vector<8x256xf32>
    %253 = arith.mulf %252, %249 : vector<8x256xf32>
    %254 = arith.addf %248, %253 : vector<8x256xf32>
    %255 = arith.addf %231, %254 : vector<8x256xf32>
    %c0_160 = arith.constant 0 : index
    %c145 = arith.constant 145 : index
    %256 = vector.load %arg8[%c0_160, %c145] : memref<16x512xf32, #tpu.memory_space<vmem>>, vector<8x256xf32>
    %c32 = arith.constant 32 : index
    %c0_161 = arith.constant 0 : index
    %c0_162 = arith.constant 0 : index
    %257 = vector.load %arg3[%c32, %c0_161, %c0_162] : memref<36x8x1xf32, #tpu.memory_space<vmem>>, vector<1x8x1xf32>
    %258 = vector.shape_cast %257 : vector<1x8x1xf32> to vector<8x1xf32>
    %259 = vector.broadcast %258 : vector<8x1xf32> to vector<8x256xf32>
    %260 = arith.mulf %259, %256 : vector<8x256xf32>
    %c2_163 = arith.constant 2 : index
    %c145_164 = arith.constant 145 : index
    %261 = vector.load %arg8[%c2_163, %c145_164] : memref<16x512xf32, #tpu.memory_space<vmem>>, vector<8x256xf32>
    %c33 = arith.constant 33 : index
    %c0_165 = arith.constant 0 : index
    %c0_166 = arith.constant 0 : index
    %262 = vector.load %arg3[%c33, %c0_165, %c0_166] : memref<36x8x1xf32, #tpu.memory_space<vmem>>, vector<1x8x1xf32>
    %263 = vector.shape_cast %262 : vector<1x8x1xf32> to vector<8x1xf32>
    %264 = vector.broadcast %263 : vector<8x1xf32> to vector<8x256xf32>
    %265 = arith.mulf %264, %261 : vector<8x256xf32>
    %266 = arith.addf %260, %265 : vector<8x256xf32>
    %c4_167 = arith.constant 4 : index
    %c145_168 = arith.constant 145 : index
    %267 = vector.load %arg8[%c4_167, %c145_168] : memref<16x512xf32, #tpu.memory_space<vmem>>, vector<8x256xf32>
    %c34 = arith.constant 34 : index
    %c0_169 = arith.constant 0 : index
    %c0_170 = arith.constant 0 : index
    %268 = vector.load %arg3[%c34, %c0_169, %c0_170] : memref<36x8x1xf32, #tpu.memory_space<vmem>>, vector<1x8x1xf32>
    %269 = vector.shape_cast %268 : vector<1x8x1xf32> to vector<8x1xf32>
    %270 = vector.broadcast %269 : vector<8x1xf32> to vector<8x256xf32>
    %271 = arith.mulf %270, %267 : vector<8x256xf32>
    %272 = arith.addf %266, %271 : vector<8x256xf32>
    %c6_171 = arith.constant 6 : index
    %c145_172 = arith.constant 145 : index
    %273 = vector.load %arg8[%c6_171, %c145_172] : memref<16x512xf32, #tpu.memory_space<vmem>>, vector<8x256xf32>
    %c35 = arith.constant 35 : index
    %c0_173 = arith.constant 0 : index
    %c0_174 = arith.constant 0 : index
    %274 = vector.load %arg3[%c35, %c0_173, %c0_174] : memref<36x8x1xf32, #tpu.memory_space<vmem>>, vector<1x8x1xf32>
    %275 = vector.shape_cast %274 : vector<1x8x1xf32> to vector<8x1xf32>
    %276 = vector.broadcast %275 : vector<8x1xf32> to vector<8x256xf32>
    %277 = arith.mulf %276, %273 : vector<8x256xf32>
    %278 = arith.addf %272, %277 : vector<8x256xf32>
    %cst_175 = arith.constant 0.000000e+00 : f32
    %279 = vector.shape_cast %10 : vector<1x256xi1> to vector<1x256xi1>
    %280 = vector.broadcast %279 : vector<1x256xi1> to vector<8x256xi1>
    %281 = vector.broadcast %cst_175 : f32 to vector<8x256xf32>
    %282 = arith.select %280, %278, %281 : vector<8x256xi1>, vector<8x256xf32>
    %283 = arith.addf %255, %282 : vector<8x256xf32>
    %cst_176 = arith.constant 0.000000e+00 : f32
    %284 = vector.broadcast %cst_176 : f32 to vector<8x256xf32>
    %285 = arith.cmpf ogt, %283, %284 : vector<8x256xf32>
    %cst_177 = arith.constant 2.000000e-01 : f32
    %286 = vector.broadcast %cst_177 : f32 to vector<8x256xf32>
    %287 = arith.mulf %286, %283 : vector<8x256xf32>
    %288 = arith.select %285, %283, %287 : vector<8x256xi1>, vector<8x256xf32>
    %c0_178 = arith.constant 0 : index
    %c128_179 = arith.constant 128 : index
    %289 = vector.load %arg8[%c0_178, %c128_179] : memref<16x512xf32, #tpu.memory_space<vmem>>, vector<8x256xf32>
    tpu.vector_store %arg8[%c0_178, %c128_179], %288 {strides = array<i32>} : memref<16x512xf32, #tpu.memory_space<vmem>>, vector<8x256xf32>,
    %c8_180 = arith.constant 8 : index
    %c128_181 = arith.constant 128 : index
    %290 = vector.load %arg8[%c8_180, %c128_181] : memref<16x512xf32, #tpu.memory_space<vmem>>, vector<8x256xf32>
    tpu.vector_store %arg8[%c8_180, %c128_181], %288 {strides = array<i32>} : memref<16x512xf32, #tpu.memory_space<vmem>>, vector<8x256xf32>,
    %c0_182 = arith.constant 0 : index
    %c0_183 = arith.constant 0 : index
    %c0_184 = arith.constant 0 : index
    %291 = vector.load %arg4[%c0_182, %c0_183, %c0_184] : memref<4x8x1xf32, #tpu.memory_space<vmem>>, vector<1x8x1xf32>
    %292 = vector.shape_cast %291 : vector<1x8x1xf32> to vector<8x1xf32>
    %293 = vector.broadcast %292 : vector<8x1xf32> to vector<8x256xf32>
    %294 = arith.mulf %293, %288 : vector<8x256xf32>
    %295 = arith.addf %12, %294 : vector<8x256xf32>
    %c1_185 = arith.constant 1 : index
    %c0_186 = arith.constant 0 : index
    %c0_187 = arith.constant 0 : index
    %296 = vector.load %arg4[%c1_185, %c0_186, %c0_187] : memref<4x8x1xf32, #tpu.memory_space<vmem>>, vector<1x8x1xf32>
    %297 = vector.shape_cast %296 : vector<1x8x1xf32> to vector<8x1xf32>
    %c2_188 = arith.constant 2 : index
    %c128_189 = arith.constant 128 : index
    %298 = vector.load %arg8[%c2_188, %c128_189] : memref<16x512xf32, #tpu.memory_space<vmem>>, vector<8x256xf32>
    %299 = vector.broadcast %297 : vector<8x1xf32> to vector<8x256xf32>
    %300 = arith.mulf %299, %298 : vector<8x256xf32>
    %301 = arith.addf %295, %300 : vector<8x256xf32>
    %c2_190 = arith.constant 2 : index
    %c0_191 = arith.constant 0 : index
    %c0_192 = arith.constant 0 : index
    %302 = vector.load %arg4[%c2_190, %c0_191, %c0_192] : memref<4x8x1xf32, #tpu.memory_space<vmem>>, vector<1x8x1xf32>
    %303 = vector.shape_cast %302 : vector<1x8x1xf32> to vector<8x1xf32>
    %c4_193 = arith.constant 4 : index
    %c128_194 = arith.constant 128 : index
    %304 = vector.load %arg8[%c4_193, %c128_194] : memref<16x512xf32, #tpu.memory_space<vmem>>, vector<8x256xf32>
    %305 = vector.broadcast %303 : vector<8x1xf32> to vector<8x256xf32>
    %306 = arith.mulf %305, %304 : vector<8x256xf32>
    %307 = arith.addf %301, %306 : vector<8x256xf32>
    %c3_195 = arith.constant 3 : index
    %c0_196 = arith.constant 0 : index
    %c0_197 = arith.constant 0 : index
    %308 = vector.load %arg4[%c3_195, %c0_196, %c0_197] : memref<4x8x1xf32, #tpu.memory_space<vmem>>, vector<1x8x1xf32>
    %309 = vector.shape_cast %308 : vector<1x8x1xf32> to vector<8x1xf32>
    %c6_198 = arith.constant 6 : index
    %c128_199 = arith.constant 128 : index
    %310 = vector.load %arg8[%c6_198, %c128_199] : memref<16x512xf32, #tpu.memory_space<vmem>>, vector<8x256xf32>
    %311 = vector.broadcast %309 : vector<8x1xf32> to vector<8x256xf32>
    %312 = arith.mulf %311, %310 : vector<8x256xf32>
    %313 = arith.addf %307, %312 : vector<8x256xf32>
    %c0_200 = arith.constant 0 : index
    %c0_201 = arith.constant 0 : index
    %c0_202 = arith.constant 0 : index
    %314 = vector.load %arg6[%c0_200, %c0_201, %c0_202] : memref<1x8x256xf32, #tpu.memory_space<vmem>>, vector<1x8x256xf32>
    %315 = vector.shape_cast %314 : vector<1x8x256xf32> to vector<8x256xf32>
    %316 = vector.shape_cast %313 : vector<8x256xf32> to vector<1x8x256xf32>
    tpu.vector_store %arg6[%c0_200, %c0_201, %c0_202], %316 {strides = array<i32>} : memref<1x8x256xf32, #tpu.memory_space<vmem>>, vector<1x8x256xf32>,
    %c0_203 = arith.constant 0 : index
    %c128_204 = arith.constant 128 : index
    %317 = vector.load %arg8[%c0_203, %c128_204] : memref<16x512xf32, #tpu.memory_space<vmem>>, vector<8x256xf32>
    tpu.vector_store %arg8[%c0_203, %c128_204], %313 {strides = array<i32>} : memref<16x512xf32, #tpu.memory_space<vmem>>, vector<8x256xf32>,
    %c0_205 = arith.constant 0 : index
    %c129_206 = arith.constant 129 : index
    %318 = vector.load %arg8[%c0_205, %c129_206] : memref<16x512xf32, #tpu.memory_space<vmem>>, vector<8x256xf32>
    %319 = arith.maximumf %313, %318 : vector<8x256xf32>
    %c0_207 = arith.constant 0 : index
    %c128_208 = arith.constant 128 : index
    %320 = vector.load %arg8[%c0_207, %c128_208] : memref<16x512xf32, #tpu.memory_space<vmem>>, vector<8x256xf32>
    tpu.vector_store %arg8[%c0_207, %c128_208], %319 {strides = array<i32>} : memref<16x512xf32, #tpu.memory_space<vmem>>, vector<8x256xf32>,
    %c0_209 = arith.constant 0 : index
    %c144_210 = arith.constant 144 : index
    %321 = vector.load %arg8[%c0_209, %c144_210] : memref<16x512xf32, #tpu.memory_space<vmem>>, vector<8x256xf32>
    %322 = arith.maximumf %319, %321 : vector<8x256xf32>
    %c0_211 = arith.constant 0 : index
    %c0_212 = arith.constant 0 : index
    %323 = vector.load %arg5[%c0_211, %c0_212] : memref<256x64xf32, #tpu.memory_space<vmem>>, vector<256x64xf32>
    %cst_213 = arith.constant dense<0.000000e+00> : vector<8x64xf32>
    %324 = tpu.matmul %322, %323, %cst_213 {dimension_numbers = #tpu.dot_dimension_numbers<[1], [0], [0], [1], [0, 0, 1, 1], [], []>} : vector<8x256xf32>, vector<256x64xf32>, vector<8x64xf32> -> vector<8x64xf32>
    %c0_214 = arith.constant 0 : index
    %c0_215 = arith.constant 0 : index
    %c0_216 = arith.constant 0 : index
    %325 = vector.load %arg7[%c0_214, %c0_215, %c0_216] : memref<1x8x64xf32, #tpu.memory_space<vmem>>, vector<1x8x64xf32>
    %326 = vector.shape_cast %325 : vector<1x8x64xf32> to vector<8x64xf32>
    %327 = vector.shape_cast %324 : vector<8x64xf32> to vector<1x8x64xf32>
    tpu.vector_store %arg7[%c0_214, %c0_215, %c0_216], %327 {strides = array<i32>} : memref<1x8x64xf32, #tpu.memory_space<vmem>>, vector<1x8x64xf32>,
    return
  }
  func.func @transform_0(%arg0: i32) -> (i32, i32, i32) {
    %c0_i32 = arith.constant 0 : i32
    %c0_i32_0 = arith.constant 0 : i32
    %c0_i32_1 = arith.constant 0 : i32
    return %arg0, %c0_i32, %c0_i32_0 : i32, i32, i32
  }
  func.func @transform_1(%arg0: i32) -> (i32, i32, i32) {
    %c0_i32 = arith.constant 0 : i32
    %c0_i32_0 = arith.constant 0 : i32
    %c0_i32_1 = arith.constant 0 : i32
    %c0_i32_2 = arith.constant 0 : i32
    return %c0_i32, %c0_i32_0, %c0_i32_1 : i32, i32, i32
  }
  func.func @transform_2(%arg0: i32) -> (i32, i32, i32) {
    %c0_i32 = arith.constant 0 : i32
    %c0_i32_0 = arith.constant 0 : i32
    %c0_i32_1 = arith.constant 0 : i32
    %c0_i32_2 = arith.constant 0 : i32
    return %c0_i32, %c0_i32_0, %c0_i32_1 : i32, i32, i32
  }
  func.func @transform_3(%arg0: i32) -> (i32, i32, i32) {
    %c0_i32 = arith.constant 0 : i32
    %c0_i32_0 = arith.constant 0 : i32
    %c0_i32_1 = arith.constant 0 : i32
    %c0_i32_2 = arith.constant 0 : i32
    return %c0_i32, %c0_i32_0, %c0_i32_1 : i32, i32, i32
  }
  func.func @transform_4(%arg0: i32) -> (i32, i32) {
    %c0_i32 = arith.constant 0 : i32
    %c0_i32_0 = arith.constant 0 : i32
    %c0_i32_1 = arith.constant 0 : i32
    return %c0_i32, %c0_i32_0 : i32, i32
  }
  func.func @transform_5(%arg0: i32) -> (i32, i32, i32) {
    %c0_i32 = arith.constant 0 : i32
    %c0_i32_0 = arith.constant 0 : i32
    %c0_i32_1 = arith.constant 0 : i32
    return %arg0, %c0_i32, %c0_i32_0 : i32, i32, i32
  }
  func.func @transform_6(%arg0: i32) -> (i32, i32, i32) {
    %c0_i32 = arith.constant 0 : i32
    %c0_i32_0 = arith.constant 0 : i32
    %c0_i32_1 = arith.constant 0 : i32
    return %arg0, %c0_i32, %c0_i32_0 : i32, i32, i32
  }
}

</mosaic_0001>

<bundles_post_ra>
// kernel: encoder_forward.1
= control target key start
LH: loop header
LB: loop body
LE: loop exit
PB: predicated region body
PF: predicated region fallthrough
CT: control target
= control target key end

     0   :  { %v1739_v0 = vmov 0   ;;  %v1740_v3 = vmov 0.0   ;;  %vm60_vm0 = vcmask 1045504   ;;  %vm88_vm1 = vcmask 1043456   ;;  %s1741_s22 = smov 17   ;;  %s1742_s27 = smov 15   ;;  %s2728_s1 = inlined_call_operand.vmem [shape: f32[4,8,1], index: 1, kind: input, shape index: {}]   ;;  %s2729_s2 = inlined_call_operand.vmem [shape: f32[36,8,1], index: 2, kind: input, shape index: {}]   ;;  %s2730_s0 = inlined_call_operand.vmem [shape: f32[1,16,256], index: 0, kind: input, shape index: {}]   ;;  %s2731_s3 = inlined_call_operand.vmem [shape: f32[4,8,1], index: 3, kind: input, shape index: {}]   ;;  %s2732_s4 = inlined_call_operand.vmem [shape: f32[256,64], index: 4, kind: input, shape index: {}]   ;;  %s2733_s5 = inlined_call_operand.vmem [shape: f32[1,8,256], index: 5, kind: output, shape index: {0}]   ;;  %s2734_s6 = inlined_call_operand.vmem [shape: f32[1,8,64], index: 6, kind: output, shape index: {1}]  }
   0x1   :  { %1688 = vset.pattern.permute.xlu1 %v1739_v0  ;;  %1687 = vset.pattern.permute.xlu0 %v1739_v0  ;;  %v1570_v1 = vld [vmem:[%s2728_s1 + $0x10] sm:$0xff]  ;;  %v37_v2 = vld [vmem:[%s2728_s1] sm:$0xff]  ;;  %22 = vst [vmem:[#allocation2] sm:$0xff] %v1740_v3  ;;  %23 = vst [vmem:[#allocation2 + $0x20] sm:$0xff] %v1740_v3  ;;  %s1743_s28 = smov 16   ;;  %vm116_vm2 = vcmask 1041408  }
   0x2   :  { %24 = vst [vmem:[#allocation2 + $0x18] sm:$0xff] %v1740_v3  ;;  %25 = vst [vmem:[#allocation2 + $0x38] sm:$0xff] %v1740_v3  ;;  %81 = vperm.xlu1 %1688, %v1570_v1   ;;  %40 = vperm.xlu0 %1687, %v37_v2   ;;  %v1571_v4 = vld [vmem:[%s2728_s1 + $0x18] sm:$0xff]  ;;  %v1569_v5 = vld [vmem:[%s2728_s1 + $0x8] sm:$0xff]  ;;  %s1744_s9 = smov 1   ;;  %s1745_s21 = smov 127  }
   0x3   :  { %v1576_v6 = vld [vmem:[%s2729_s2 + $0x28] sm:$0xff]  ;;  %v1573_v9 = vld [vmem:[%s2729_s2 + $0x10] sm:$0xff]  ;;  %v1574_v14 = vld [vmem:[%s2729_s2 + $0x18] sm:$0xff]  ;;  %s1746_s7 = smov 113   ;;  %s1747_s1 = smov 112   ;;  %vm185_vm5 = vcmask 138240  }
   0x4   :  { %v1572_v7 = vld [vmem:[%s2729_s2 + $0x8] sm:$0xff]  ;;  %v1577_v15 = vld [vmem:[%s2729_s2 + $0x30] sm:$0xff]  ;;  %v1578_v25 = vld [vmem:[%s2729_s2 + $0x38] sm:$0xff]  ;;  %s1748_s25 = smov 111   ;;  %vm354_vm6 = vcmask 130048   ;;  %vm477_vm7 = vcmask 121856  }
   0x5   :  { %v1580_v8 = vld [vmem:[%s2729_s2 + $0x48] sm:$0xff]  ;;  %v1581_v21 = vld [vmem:[%s2729_s2 + $0x50] sm:$0xff]  ;;  %v1582_v27 = vld [vmem:[%s2729_s2 + $0x58] sm:$0xff]  ;;  %vm606_vm8 = vcmask 7168   ;;  %vm619_vm9 = vcmask 1039360   ;;  %vm490_vm10 = vcmask 924672  }
   0x6   :  { %109 = vperm.xlu1 %1688, %v1571_v4   ;;  %53 = vperm.xlu0 %1687, %v1569_v5   ;;  %v1584_v20 = vld [vmem:[%s2729_s2 + $0x68] sm:$0xff]  ;;  %v1585_v26 = vld [vmem:[%s2729_s2 + $0x70] sm:$0xff]  ;;  %v1586_v31 = vld [vmem:[%s2729_s2 + $0x78] sm:$0xff]  ;;  %vm367_vm11 = vcmask 916480   ;;  %vm198_vm12 = vcmask 908288  }
   0x7   :  { %v1592_v30 = vld [vmem:[%s2729_s2 + $0xa8] sm:$0xff]  ;;  %v1593_v36 = vld [vmem:[%s2729_s2 + $0xb0] sm:$0xff]  ;;  %v1594_v42 = vld [vmem:[%s2729_s2 + $0xb8] sm:$0xff] }
   0x8   :  { %v151_v10 = vld [vmem:[#allocation2] sm:$0xfc]  ;;  %v154_v11 = vld [vmem:[#allocation2 + $0x20] sm:$0x3]  ;;  %v1596_v35 = vld [vmem:[%s2729_s2 + $0xc8] sm:$0xff] }
   0x9   :  { %v206_v12 = vld [vmem:[#allocation2] sm:$0xf0]  ;;  %v209_v13 = vld [vmem:[#allocation2 + $0x20] sm:$0xf]  ;;  %v170_v16 = vrot.slane %v151_v10, 2  ;;  %v171_v17 = vrot.slane %v154_v11, 2 }
   0xa   :  { %345 = vperm.xlu1 %1688, %v1576_v6   ;;  %161 = vperm.xlu0 %1687, %v1572_v7   ;;  %v225_v18 = vrot.slane %v206_v12, 4  ;;  %v226_v19 = vrot.slane %v209_v13, 4  ;;  %v259_v28 = vld [vmem:[#allocation2] sm:$0xc0]  ;;  %v262_v29 = vld [vmem:[#allocation2 + $0x20] sm:$0x3f] }
   0xb   :  { %v172_v22 = vsel %vm60_vm0, %v170_v16, %v171_v17  ;;  %v278_v32 = vrot.slane %v259_v28, 6  ;;  %v279_v33 = vrot.slane %v262_v29, 6  ;;  %v773_v37 = vld [vmem:[#allocation2 + $0x18] sm:$0xfc]  ;;  %v776_v38 = vld [vmem:[#allocation2 + $0x38] sm:$0x3] }
   0xc   :  { %v227_v23 = vsel %vm88_vm1, %v225_v18, %v226_v19  ;;  %v826_v39 = vld [vmem:[#allocation2 + $0x18] sm:$0xf0]  ;;  %v829_v40 = vld [vmem:[#allocation2 + $0x38] sm:$0xf]  ;;  %v1597_v41 = vld [vmem:[%s2729_s2 + $0xd0] sm:$0xff]  ;;  %v796_v43 = vrot.slane %v773_v37, 2 }
   0xd   :  { %v1689_v24 = vpack.i.bf16 %v227_v23, %v172_v22  ;;  %v280_v34 = vsel %vm116_vm2, %v278_v32, %v279_v33  ;;  %v797_v44 = vrot.slane %v776_v38, 2  ;;  %v849_v45 = vrot.slane %v826_v39, 4  ;;  %v1600_v47 = vld [vmem:[%s2729_s2 + $0xe8] sm:$0xff]  ;;  %v1598_v51 = vld [vmem:[%s2729_s2 + $0xd8] sm:$0xff]  ;;  %v1601_v52 = vld [vmem:[%s2729_s2 + $0xf0] sm:$0xff] }
   0xe   :  { %468 = vperm.xlu1 %1688, %v1580_v8   ;;  %216 = vperm.xlu0 %1687, %v1573_v9   ;;  %v850_v46 = vrot.slane %v829_v40, 4  ;;  %v1604_v53 = vld [vmem:[%s2729_s2 + $0x108] sm:$0xff]  ;;  %v879_v54 = vld [vmem:[#allocation2 + $0x18] sm:$0xc0]  ;;  %v882_v55 = vld [vmem:[#allocation2 + $0x38] sm:$0x3f] }
   0xf   :  { %v798_v48 = vsel %vm60_vm0, %v796_v43, %v797_v44  ;;  %v1605_v56 = vld [vmem:[%s2729_s2 + $0x110] sm:$0xff]  ;;  %v902_v57 = vrot.slane %v879_v54, 6  ;;  %v903_v58 = vrot.slane %v882_v55, 6  ;;  %v1602_v59 = vld [vmem:[%s2729_s2 + $0xf8] sm:$0xff]  ;;  %v45_v62 = vld [vmem:[%s2730_s0] sm:$0xfc] }
  0x10   :  { %v851_v49 = vsel %vm88_vm1, %v849_v45, %v850_v46  ;;  %v1606_v61 = vld [vmem:[%s2729_s2 + $0x118] sm:$0xff]  ;;  %v46_v63 = vld [vmem:[%s2730_s0 + $0x8] sm:$0xfc]  ;;  %v47_v0 = vld [vmem:[%s2730_s0 + $0x10] sm:$0x3]  ;;  %v61_v8 = vrot.slane %v45_v62, 2 }
  0x11   :  { %v1863_v50 = vpack.i.bf16 %v851_v49, %v798_v48  ;;  %v1885_v60 = vsel %vm116_vm2, %v902_v57, %v903_v58  ;;  %v48_v1 = vld [vmem:[%s2730_s0 + $0x18] sm:$0x3]  ;;  %v73_v2 = vld [vmem:[%s2730_s0] sm:$0xf0]  ;;  %v74_v3 = vld [vmem:[%s2730_s0 + $0x8] sm:$0xf0] }
  0x12   :  { %269 = vperm.xlu1 %1688, %v1574_v14   ;;  %379 = vperm.xlu0 %1687, %v1577_v15   ;;  %v75_v4 = vld [vmem:[%s2730_s0 + $0x10] sm:$0xf]  ;;  %v76_v5 = vld [vmem:[%s2730_s0 + $0x18] sm:$0xf]  ;;  %v101_v6 = vld [vmem:[%s2730_s0] sm:$0xc0] }
  0x13   :  { %v102_v7 = vld [vmem:[%s2730_s0 + $0x8] sm:$0xc0]  ;;  %v62_v9 = vrot.slane %v47_v0, 2  ;;  %v64_v10 = vrot.slane %v46_v63, 2  ;;  %v65_v11 = vrot.slane %v48_v1, 2  ;;  %v89_v15 = vrot.slane %v73_v2, 4 }
  0x14   :  { %v103_v12 = vld [vmem:[%s2730_s0 + $0x10] sm:$0x3f]  ;;  %v104_v13 = vld [vmem:[%s2730_s0 + $0x18] sm:$0x3f]  ;;  %v90_v16 = vrot.slane %v75_v4, 4  ;;  %v92_v17 = vrot.slane %v74_v3, 4 }
  0x15   :  { %v93_v18 = vrot.slane %v76_v5, 4  ;;  %v35_v22 = vld [vmem:[%s2730_s0] sm:$0xff]  ;;  %v36_v23 = vld [vmem:[%s2730_s0 + $0x8] sm:$0xff] }
  0x16   :  { %597 = vperm.xlu1 %1688, %v1584_v20   ;;  %502 = vperm.xlu0 %1687, %v1581_v21   ;;  %v117_v20 = vrot.slane %v101_v6, 6  ;;  %v120_v21 = vrot.slane %v102_v7, 6  ;;  %v91_v28 = vsel %vm88_vm1, %v89_v15, %v90_v16 }
  0x17   :  { %v94_v29 = vsel %vm88_vm1, %v92_v17, %v93_v18 }
  0x1a   :  { %1690 = vrot.lane.b32.xlu1 %v1689_v24, %s1741_s22  ;;  %411 = vperm.xlu0 %1687, %v1578_v25   ;;  %v121_v25 = vrot.slane %v104_v13, 6 }
  0x1c   :  { %v122_v37 = vsel %vm116_vm2, %v120_v21, %v121_v25 }
  0x1e   :  { %631 = vperm.xlu1 %1688, %v1585_v26   ;;  %534 = vperm.xlu0 %1687, %v1582_v27   ;;  %v63_v26 = vsel %vm60_vm0, %v61_v8, %v62_v9  ;;  %v66_v27 = vsel %vm60_vm0, %v64_v10, %v65_v11 }
  0x22   :  { %1700 = vrot.lane.b32.xlu1 %v1689_v24, %s1742_s27  ;;  %1695 = vrot.lane.b32.xlu0 %v1689_v24, %s1743_s28 }
  0x26   :  { %781 = vperm.xlu1 %1688, %v1592_v30   ;;  %663 = vperm.xlu0 %1687, %v1586_v31  }
  0x2a   :  { %1705 = vrot.lane.b32.xlu1 %v1689_v24, %s1744_s9  ;;  %287 = vrot.lane.b32.xlu0 %v280_v34, %s1741_s22  ;;  %v118_v24 = vrot.slane %v103_v12, 6 }
  0x2e   :  { %961 = vperm.xlu1 %1688, %v1596_v35   ;;  %834 = vperm.xlu0 %1687, %v1593_v36   ;;  %v119_v36 = vsel %vm116_vm2, %v117_v20, %v118_v24 }
  0x32   :  { %537 = vrot.lane.b32.xlu1 %v280_v34, %s1742_s27  ;;  %414 = vrot.lane.b32.xlu0 %v280_v34, %s1743_s28 }
  0x36   :  { %993 = vperm.xlu1 %1688, %v1597_v41   ;;  %887 = vperm.xlu0 %1687, %v1594_v42  }
  0x3a   :  { %666 = vrot.lane.b32.xlu1 %v280_v34, %s1744_s9  ;;  %1084 = vperm.xlu0 %1687, %v1600_v47  }
  0x3e   :  { %1025 = vperm.xlu1 %1688, %v1598_v51   ;;  %1710 = vrot.lane.b32.xlu0 %v1863_v50, %s1745_s21 }
  0x42   :  { %1116 = vperm.xlu1 %1688, %v1601_v52   ;;  %1205 = vperm.xlu0 %1687, %v1604_v53  }
  0x46   :  { %1237 = vperm.xlu1 %1688, %v1605_v56   ;;  %1715 = vrot.lane.b32.xlu0 %v1863_v50, %s1746_s7 }
  0x4a   :  { %1148 = vperm.xlu0 %1687, %v1602_v59   ;;  %909 = vrot.lane.b32.xlu1 %v1885_v60, %s1745_s21 }
  0x4e   :  { %1269 = vperm.xlu0 %1687, %v1606_v61   ;;  %1720 = vrot.lane.b32.xlu1 %v1863_v50, %s1747_s1 }
  0x81   :  { %v82_v14 = vpop.permute.xlu1 %81  ;;  %v41_v19 = vpop.permute.xlu0 %40 }
  0x82   :  { %v43_v31 = vmul.f32 %v41_v19, %v35_v22  ;;  %v44_v32 = vmul.f32 %v41_v19, %v36_v23  ;;  %v97_v38 = vmul.f32 %v91_v28, %v82_v14  ;;  %v98_v39 = vmul.f32 %v94_v29, %v82_v14 }
  0x85   :  { %v54_v30 = vpop.permute.xlu0 %53  ;;  %v110_v35 = vpop.permute.xlu1 %109 }
  0x86   :  { %v69_v33 = vmul.f32 %v63_v26, %v54_v30  ;;  %v70_v34 = vmul.f32 %v66_v27, %v54_v30  ;;  %v125_v42 = vmul.f32 %v119_v36, %v110_v35  ;;  %v126_v43 = vmul.f32 %v122_v37, %v110_v35 }
  0x88   :  { %v71_v40 = vadd.f32 %v69_v33, %v43_v31  ;;  %v72_v41 = vadd.f32 %v70_v34, %v44_v32 }
  0x89   :  { %v1967_v9 = vpop.permute.xlu1 %345  ;;  %v1974_v11 = vpop.permute.xlu0 %161 }
  0x8a   :  { %v99_v44 = vadd.f32 %v97_v38, %v71_v40  ;;  %v100_v45 = vadd.f32 %v98_v39, %v72_v41 }
  0x8c   :  { %v127_v46 = vadd.f32 %v125_v42, %v99_v44  ;;  %v128_v47 = vadd.f32 %v126_v43, %v100_v45 }
  0x8d   :  { %v1982_v16 = vpop.permute.xlu1 %468  ;;  %v1984_v17 = vpop.permute.xlu0 %216 }
  0x8e   :  { %vm129_vm3 = vcmp.gt.f32.partialorder %v127_v46, 0.0  ;;  %vm130_vm4 = vcmp.gt.f32.partialorder %v128_v47, 0.0  ;;  %v131_v48 = vmul.f32 0.2, %v127_v46  ;;  %v132_v49 = vmul.f32 0.2, %v128_v47 }
  0x90   :  { %v1942_v51 = vsel %vm129_vm3, %v127_v46, %v131_v48  ;;  %v1944_v52 = vsel %vm130_vm4, %v128_v47, %v132_v49 }
  0x91   :  { %135 = vst [vmem:[#allocation2 + $0x8] sm:$0xff] %v1942_v51  ;;  %136 = vst [vmem:[#allocation2 + $0x10] sm:$0xff] %v1944_v52  ;;  %v1993_v23 = vpop.permute.xlu1 %269  ;;  %v2000_v25 = vpop.permute.xlu0 %379 }
  0x92   :  { %137 = vst [vmem:[#allocation2 + $0x28] sm:$0xff] %v1942_v51  ;;  %138 = vst [vmem:[#allocation2 + $0x30] sm:$0xff] %v1944_v52 }
  0x95   :  { %v2008_v26 = vpop.permute.xlu1 %597  ;;  %v2010_v27 = vpop.permute.xlu0 %502 }
  0x98   :  { %v153_v53 = vld [vmem:[#allocation2 + $0x10] sm:$0xfc]  ;;  %v152_v55 = vld [vmem:[#allocation2 + $0x8] sm:$0xfc] }
  0x99   :  { %v156_v54 = vld [vmem:[#allocation2 + $0x30] sm:$0x3]  ;;  %v176_v56 = vrot.slane %v153_v53, 2  ;;  %v155_v58 = vld [vmem:[#allocation2 + $0x28] sm:$0x3]  ;;  %v173_v59 = vrot.slane %v152_v55, 2  ;;  %v2016_v28 = vpop.permute.xlu1 %1690  ;;  %v2020_v29 = vpop.permute.xlu0 %411 }
  0x9a   :  { %v177_v57 = vrot.slane %v156_v54, 2  ;;  %v174_v61 = vrot.slane %v155_v58, 2  ;;  %v207_v0 = vld [vmem:[#allocation2 + $0x8] sm:$0xf0]  ;;  %v210_v1 = vld [vmem:[#allocation2 + $0x28] sm:$0xf] }
  0x9b   :  { %v208_v2 = vld [vmem:[#allocation2 + $0x10] sm:$0xf0]  ;;  %v211_v3 = vld [vmem:[#allocation2 + $0x30] sm:$0xf]  ;;  %v228_v4 = vrot.slane %v207_v0, 4  ;;  %v229_v5 = vrot.slane %v210_v1, 4 }
  0x9c   :  { %v1951_v62 = vsel %vm60_vm0, %v176_v56, %v177_v57  ;;  %v1956_v63 = vsel %vm60_vm0, %v173_v59, %v174_v61  ;;  %v231_v6 = vrot.slane %v208_v2, 4  ;;  %v232_v7 = vrot.slane %v211_v3, 4  ;;  %v260_v12 = vld [vmem:[#allocation2 + $0x8] sm:$0xc0]  ;;  %v263_v13 = vld [vmem:[#allocation2 + $0x28] sm:$0x3f] }
  0x9d   :  { %183 = vrot.lane.b32.xlu1 %v1951_v62, %s1741_s22  ;;  %181 = vrot.lane.b32.xlu0 %v1956_v63, %s1741_s22  ;;  %v1965_v8 = vsel %vm88_vm1, %v228_v4, %v229_v5  ;;  %v261_v14 = vld [vmem:[#allocation2 + $0x10] sm:$0xc0]  ;;  %v264_v15 = vld [vmem:[#allocation2 + $0x30] sm:$0x3f]  ;;  %v281_v18 = vrot.slane %v260_v12, 6  ;;  %v282_v19 = vrot.slane %v263_v13, 6  ;;  %v2028_v30 = vpop.permute.xlu1 %631  ;;  %v2030_v31 = vpop.permute.xlu0 %534 }
  0x9e   :  { %v1972_v10 = vsel %vm88_vm1, %v231_v6, %v232_v7  ;;  %v284_v20 = vrot.slane %v261_v14, 6  ;;  %v285_v21 = vrot.slane %v264_v15, 6  ;;  %v772_v32 = vld [vmem:[#allocation2 + $0x10] sm:$0xfc]  ;;  %v775_v33 = vld [vmem:[#allocation2 + $0x30] sm:$0x3] }
  0x9f   :  { %v1991_v22 = vsel %vm116_vm2, %v281_v18, %v282_v19  ;;  %v771_v34 = vld [vmem:[#allocation2 + $0x8] sm:$0xfc]  ;;  %v774_v35 = vld [vmem:[#allocation2 + $0x28] sm:$0x3]  ;;  %v793_v36 = vrot.slane %v772_v32, 2  ;;  %v794_v37 = vrot.slane %v775_v33, 2 }
  0xa0   :  { %v1998_v24 = vsel %vm116_vm2, %v284_v20, %v285_v21  ;;  %v790_v39 = vrot.slane %v771_v34, 2  ;;  %v791_v40 = vrot.slane %v774_v35, 2  ;;  %v825_v41 = vld [vmem:[#allocation2 + $0x10] sm:$0xf0]  ;;  %v828_v42 = vld [vmem:[#allocation2 + $0x30] sm:$0xf] }
  0xa1   :  { %350 = vrot.lane.b32.xlu1 %v1956_v63, %s1743_s28  ;;  %352 = vrot.lane.b32.xlu0 %v1951_v62, %s1743_s28  ;;  %v2036_v38 = vpop.permute.xlu1 %1700  ;;  %v2040_v43 = vpop.permute.xlu0 %1695  ;;  %v824_v44 = vld [vmem:[#allocation2 + $0x8] sm:$0xf0]  ;;  %v827_v45 = vld [vmem:[#allocation2 + $0x28] sm:$0xf]  ;;  %v795_v46 = vsel %vm60_vm0, %v793_v36, %v794_v37  ;;  %v846_v47 = vrot.slane %v825_v41, 4  ;;  %v847_v48 = vrot.slane %v828_v42, 4 }
  0xa2   :  { %v792_v49 = vsel %vm60_vm0, %v790_v39, %v791_v40  ;;  %v843_v53 = vrot.slane %v824_v44, 4  ;;  %v844_v54 = vrot.slane %v827_v45, 4  ;;  %v877_v59 = vld [vmem:[#allocation2 + $0x8] sm:$0xc0]  ;;  %v880_v61 = vld [vmem:[#allocation2 + $0x28] sm:$0x3f] }
  0xa3   :  { %v848_v57 = vsel %vm88_vm1, %v846_v47, %v847_v48  ;;  %v878_v0 = vld [vmem:[#allocation2 + $0x10] sm:$0xc0]  ;;  %v881_v1 = vld [vmem:[#allocation2 + $0x30] sm:$0x3f]  ;;  %v896_v2 = vrot.slane %v877_v59, 6  ;;  %v897_v3 = vrot.slane %v880_v61, 6 }
  0xa4   :  { %v845_v58 = vsel %vm88_vm1, %v843_v53, %v844_v54  ;;  %v899_v5 = vrot.slane %v878_v0, 6  ;;  %v900_v6 = vrot.slane %v881_v1, 6  ;;  %v1575_v40 = vld [vmem:[%s2729_s2 + $0x20] sm:$0xff]  ;;  %v1692_v54 = vunpack.i.l.bf16 %v2016_v28 }
  0xa5   :  { %236 = vrot.lane.b32.xlu1 %v1965_v8, %s1741_s22  ;;  %238 = vrot.lane.b32.xlu0 %v1972_v10, %s1741_s22  ;;  %v2048_v55 = vpop.permute.xlu1 %781  ;;  %v2050_v56 = vpop.permute.xlu0 %663  ;;  %v898_v12 = vsel %vm116_vm2, %v896_v2, %v897_v3  ;;  %v142_v41 = vld [vmem:[%s2729_s2] sm:$0xff]  ;;  %v1697_v1 = vunpack.i.l.bf16 %v2040_v43 }
  0xa6   :  { %v901_v13 = vsel %vm116_vm2, %v899_v5, %v900_v6  ;;  %v1579_v45 = vld [vmem:[%s2729_s2 + $0x40] sm:$0xff] }
  0xa7   :  { %v1595_v47 = vld [vmem:[%s2729_s2 + $0xc0] sm:$0xff] }
  0xa8   :  { %v1591_v48 = vld [vmem:[%s2729_s2 + $0xa0] sm:$0xff] }
  0xa9   :  { %475 = vrot.lane.b32.xlu1 %v1951_v62, %s1742_s27  ;;  %473 = vrot.lane.b32.xlu0 %v1956_v63, %s1742_s27  ;;  %v2056_v4 = vpop.permute.xlu1 %1705  ;;  %v2059_v7 = vpop.permute.xlu0 %287  ;;  %v1603_v53 = vld [vmem:[%s2729_s2 + $0x100] sm:$0xff] }
  0xad   :  { %386 = vrot.lane.b32.xlu1 %v1972_v10, %s1743_s28  ;;  %384 = vrot.lane.b32.xlu0 %v1965_v8, %s1743_s28  ;;  %v2066_v14 = vpop.permute.xlu1 %961  ;;  %v2068_v15 = vpop.permute.xlu0 %834 }
  0xb1   :  { %289 = vrot.lane.b32.xlu1 %v1991_v22, %s1741_s22  ;;  %291 = vrot.lane.b32.xlu0 %v1998_v24, %s1741_s22  ;;  %v2072_v18 = vpop.permute.xlu1 %537  ;;  %v2075_v19 = vpop.permute.xlu0 %414 }
  0xb5   :  { %507 = vrot.lane.b32.xlu1 %v1965_v8, %s1742_s27  ;;  %509 = vrot.lane.b32.xlu0 %v1972_v10, %s1742_s27  ;;  %v2080_v20 = vpop.permute.xlu1 %993  ;;  %v2082_v21 = vpop.permute.xlu0 %887 }
  0xb9   :  { %604 = vrot.lane.b32.xlu1 %v1951_v62, %s1744_s9  ;;  %602 = vrot.lane.b32.xlu0 %v1956_v63, %s1744_s9  ;;  %v2087_v32 = vpop.permute.xlu1 %666  ;;  %v2091_v33 = vpop.permute.xlu0 %1084 }
  0xbd   :  { %416 = vrot.lane.b32.xlu1 %v1991_v22, %s1743_s28  ;;  %418 = vrot.lane.b32.xlu0 %v1998_v24, %s1743_s28  ;;  %v2096_v34 = vpop.permute.xlu1 %1025  ;;  %v2098_v35 = vpop.permute.xlu0 %1710 }
  0xc1   :  { %541 = vrot.lane.b32.xlu1 %v1998_v24, %s1742_s27  ;;  %539 = vrot.lane.b32.xlu0 %v1991_v22, %s1742_s27  ;;  %v2102_v36 = vpop.permute.xlu1 %1116 }
  0xc5   :  { %638 = vrot.lane.b32.xlu1 %v1972_v10, %s1744_s9  ;;  %636 = vrot.lane.b32.xlu0 %v1965_v8, %s1744_s9  ;;  %v2111_v37 = vpop.permute.xlu1 %1237 }
  0xc9   :  { %670 = vrot.lane.b32.xlu1 %v1998_v24, %s1744_s9  ;;  %668 = vrot.lane.b32.xlu0 %v1991_v22, %s1744_s9  ;;  %v2124_v42 = vpop.permute.xlu1 %909 }
  0xcd   :  { %801 = vrot.lane.b32.xlu1 %v795_v46, %s1745_s21  ;;  %799 = vrot.lane.b32.xlu0 %v792_v49, %s1745_s21 }
  0xd1   :  { %854 = vrot.lane.b32.xlu1 %v848_v57, %s1745_s21  ;;  %852 = vrot.lane.b32.xlu0 %v845_v58, %s1745_s21 }
  0xd5   :  { %966 = vrot.lane.b32.xlu1 %v795_v46, %s1746_s7  ;;  %964 = vrot.lane.b32.xlu0 %v792_v49, %s1746_s7 }
  0xd9   :  { %905 = vrot.lane.b32.xlu1 %v898_v12, %s1745_s21  ;;  %907 = vrot.lane.b32.xlu0 %v901_v13, %s1745_s21 }
  0xdd   :  { %998 = vrot.lane.b32.xlu1 %v848_v57, %s1746_s7  ;;  %996 = vrot.lane.b32.xlu0 %v845_v58, %s1746_s7 }
  0xe1   :  { %1087 = vrot.lane.b32.xlu1 %v792_v49, %s1747_s1  ;;  %1089 = vrot.lane.b32.xlu0 %v795_v46, %s1747_s1 }
  0xe5   :  { %1030 = vrot.lane.b32.xlu1 %v901_v13, %s1746_s7  ;;  %1028 = vrot.lane.b32.xlu0 %v898_v12, %s1746_s7 }
  0xe9   :  { %1208 = vrot.lane.b32.xlu1 %v792_v49, %s1748_s25  ;;  %1032 = vrot.lane.b32.xlu0 %v1885_v60, %s1746_s7 }
  0xed   :  { %1725 = vrot.lane.b32.xlu1 %v1863_v50, %s1748_s25  ;;  %1210 = vrot.lane.b32.xlu0 %v795_v46, %s1748_s25  ;;  %v2105_v50 = vpop.permute.xlu0 %1205  ;;  %v2134_v46 = vpop.permute.xlu1 %1720 }
  0xf1   :  { %1121 = vrot.lane.b32.xlu1 %v848_v57, %s1747_s1  ;;  %1119 = vrot.lane.b32.xlu0 %v845_v58, %s1747_s1  ;;  %v2113_v39 = vpop.permute.xlu0 %1715 }
  0xf5   :  { %1242 = vrot.lane.b32.xlu1 %v848_v57, %s1748_s25  ;;  %1240 = vrot.lane.b32.xlu0 %v845_v58, %s1748_s25  ;;  %v2126_v44 = vpop.permute.xlu0 %1148  ;;  %v1599_v58 = vld [vmem:[%s2729_s2 + $0xe0] sm:$0xff] }
  0xf9   :  { %1153 = vrot.lane.b32.xlu1 %v901_v13, %s1747_s1  ;;  %1151 = vrot.lane.b32.xlu0 %v898_v12, %s1747_s1  ;;  %v2142_v49 = vpop.permute.xlu0 %1269 }
  0xfd   :  { %1272 = vrot.lane.b32.xlu1 %v898_v12, %s1748_s25  ;;  %1155 = vrot.lane.b32.xlu0 %v1885_v60, %s1747_s1 }
 0x101   :  { %1276 = vrot.lane.b32.xlu1 %v1885_v60, %s1748_s25  ;;  %1274 = vrot.lane.b32.xlu0 %v901_v13, %s1748_s25  ;;  %v1583_v60 = vld [vmem:[%s2729_s2 + $0x60] sm:$0xff] }
 0x105   :  { %335 = vperm.xlu1 %1688, %v1575_v40   ;;  %145 = vperm.xlu0 %1687, %v142_v41   ;;  %v1693_v40 = vunpack.i.h.bf16 %v2016_v28 }
 0x109   :  { %587 = vperm.xlu1 %1688, %v1583_v60   ;;  %458 = vperm.xlu0 %1687, %v1579_v45  }
 0x10d   :  { %951 = vperm.xlu1 %1688, %v1595_v47   ;;  %765 = vperm.xlu0 %1687, %v1591_v48  }
 0x10f   :  { %v184_v57 = vpop.permute.xlu1 %183  ;;  %v182_v59 = vpop.permute.xlu0 %181 }
 0x110   :  { %v186_v61 = vsel %vm185_vm5, %v1692_v54, %v182_v59  ;;  %v187_v0 = vsel %vm185_vm5, %v182_v59, %v184_v57 }
 0x111   :  { %1195 = vperm.xlu1 %1688, %v1603_v53   ;;  %1074 = vperm.xlu0 %1687, %v1599_v58   ;;  %v191_v2 = vmul.f32 %v187_v0, %v1974_v11  ;;  %v190_v5 = vmul.f32 %v186_v61, %v1974_v11  ;;  %v1702_v53 = vunpack.i.l.bf16 %v2036_v38  ;;  %v1698_v61 = vunpack.i.h.bf16 %v2040_v43 }
 0x113   :  { %v351_v3 = vpop.permute.xlu1 %350  ;;  %v353_v12 = vpop.permute.xlu0 %352 }
 0x114   :  { %v355_v6 = vsel %vm354_vm6, %v1697_v1, %v351_v3  ;;  %v356_v13 = vsel %vm354_vm6, %v351_v3, %v353_v12 }
 0x115   :  { %196 = vrot.lane.b32.xlu1 %v191_v2, %s1748_s25  ;;  %194 = vrot.lane.b32.xlu0 %v190_v5, %s1748_s25  ;;  %v359_v41 = vmul.f32 %v355_v6, %v1967_v9  ;;  %v360_v45 = vmul.f32 %v356_v13, %v1967_v9 }
 0x117   :  { %v237_v60 = vpop.permute.xlu1 %236  ;;  %v239_v48 = vpop.permute.xlu0 %238 }
 0x118   :  { %v240_v47 = vsel %vm185_vm5, %v1693_v40, %v237_v60  ;;  %v241_v11 = vsel %vm185_vm5, %v237_v60, %v239_v48 }
 0x119   :  { %363 = vrot.lane.b32.xlu1 %v359_v41, %s1747_s1  ;;  %365 = vrot.lane.b32.xlu0 %v360_v45, %s1747_s1  ;;  %v244_v28 = vmul.f32 %v240_v47, %v1984_v17  ;;  %v245_v57 = vmul.f32 %v241_v11, %v1984_v17  ;;  %v1703_v41 = vunpack.i.h.bf16 %v2036_v38 }
 0x11b   :  { %v476_v54 = vpop.permute.xlu1 %475  ;;  %v474_v58 = vpop.permute.xlu0 %473 }
 0x11c   :  { %v478_v9 = vsel %vm477_vm7, %v1702_v53, %v474_v58  ;;  %v479_v59 = vsel %vm477_vm7, %v474_v58, %v476_v54 }
 0x11d   :  { %248 = vrot.lane.b32.xlu1 %v244_v28, %s1748_s25  ;;  %250 = vrot.lane.b32.xlu0 %v245_v57, %s1748_s25  ;;  %v482_v0 = vmul.f32 %v478_v9, %v1982_v16  ;;  %v483_v2 = vmul.f32 %v479_v59, %v1982_v16 }
 0x11f   :  { %v387_v1 = vpop.permute.xlu1 %386  ;;  %v385_v3 = vpop.permute.xlu0 %384 }
 0x120   :  { %v388_v5 = vsel %vm354_vm6, %v1698_v61, %v385_v3  ;;  %v389_v17 = vsel %vm354_vm6, %v385_v3, %v387_v1 }
 0x121   :  { %486 = vrot.lane.b32.xlu1 %v482_v0, %s1746_s7  ;;  %488 = vrot.lane.b32.xlu0 %v483_v2, %s1746_s7  ;;  %v393_v6 = vmul.f32 %v389_v17, %v2000_v25  ;;  %v392_v13 = vmul.f32 %v388_v5, %v2000_v25 }
 0x123   :  { %v290_v12 = vpop.permute.xlu1 %289  ;;  %v292_v43 = vpop.permute.xlu0 %291 }
 0x124   :  { %v293_v40 = vsel %vm185_vm5, %v2059_v7, %v290_v12  ;;  %v294_v16 = vsel %vm185_vm5, %v290_v12, %v292_v43  ;;  %v1707_v7 = vunpack.i.l.bf16 %v2056_v4 }
 0x125   :  { %398 = vrot.lane.b32.xlu1 %v393_v6, %s1747_s1  ;;  %396 = vrot.lane.b32.xlu0 %v392_v13, %s1747_s1  ;;  %v298_v60 = vmul.f32 %v294_v16, %v1993_v23  ;;  %v297_v47 = vmul.f32 %v293_v40, %v1993_v23 }
 0x127   :  { %v508_v45 = vpop.permute.xlu1 %507  ;;  %v510_v48 = vpop.permute.xlu0 %509 }
 0x128   :  { %v511_v25 = vsel %vm477_vm7, %v1703_v41, %v508_v45  ;;  %v512_v11 = vsel %vm477_vm7, %v508_v45, %v510_v48  ;;  %v1712_v45 = vunpack.i.l.bf16 %v2098_v35 }
 0x129   :  { %303 = vrot.lane.b32.xlu1 %v298_v60, %s1748_s25  ;;  %301 = vrot.lane.b32.xlu0 %v297_v47, %s1748_s25  ;;  %v516_v53 = vmul.f32 %v512_v11, %v2010_v27  ;;  %v515_v28 = vmul.f32 %v511_v25, %v2010_v27 }
 0x12b   :  { %v605_v38 = vpop.permute.xlu1 %604  ;;  %v603_v54 = vpop.permute.xlu0 %602 }
 0x12c   :  { %v607_v23 = vsel %vm606_vm8, %v1707_v7, %v603_v54  ;;  %v608_v57 = vsel %vm606_vm8, %v603_v54, %v605_v38 }
 0x12d   :  { %521 = vrot.lane.b32.xlu1 %v516_v53, %s1746_s7  ;;  %519 = vrot.lane.b32.xlu0 %v515_v28, %s1746_s7  ;;  %v612_v58 = vmul.f32 %v608_v57, %v2008_v26  ;;  %v611_v59 = vmul.f32 %v607_v23, %v2008_v26  ;;  %v1717_v57 = vunpack.i.l.bf16 %v2113_v39 }
 0x12f   :  { %v417_v9 = vpop.permute.xlu1 %416  ;;  %v419_v61 = vpop.permute.xlu0 %418 }
 0x130   :  { %v420_v0 = vsel %vm354_vm6, %v2075_v19, %v417_v9  ;;  %v421_v27 = vsel %vm354_vm6, %v417_v9, %v419_v61  ;;  %v1708_v19 = vunpack.i.h.bf16 %v2056_v4 }
 0x131   :  { %617 = vrot.lane.b32.xlu1 %v612_v58, %s1745_s21  ;;  %615 = vrot.lane.b32.xlu0 %v611_v59, %s1745_s21  ;;  %v425_v1 = vmul.f32 %v421_v27, %v2020_v29  ;;  %v424_v3 = vmul.f32 %v420_v0, %v2020_v29 }
 0x133   :  { %v542_v2 = vpop.permute.xlu1 %541  ;;  %v540_v5 = vpop.permute.xlu0 %539 }
 0x134   :  { %v543_v17 = vsel %vm477_vm7, %v2072_v18, %v540_v5  ;;  %v544_v26 = vsel %vm477_vm7, %v540_v5, %v542_v2  ;;  %v1718_v5 = vunpack.i.h.bf16 %v2113_v39 }
 0x135   :  { %430 = vrot.lane.b32.xlu1 %v425_v1, %s1747_s1  ;;  %428 = vrot.lane.b32.xlu0 %v424_v3, %s1747_s1  ;;  %v547_v6 = vmul.f32 %v543_v17, %v2030_v31  ;;  %v548_v13 = vmul.f32 %v544_v26, %v2030_v31 }
 0x137   :  { %v639_v12 = vpop.permute.xlu1 %638  ;;  %v637_v43 = vpop.permute.xlu0 %636 }
 0x138   :  { %v640_v29 = vsel %vm606_vm8, %v1708_v19, %v637_v43  ;;  %v641_v40 = vsel %vm606_vm8, %v637_v43, %v639_v12 }
 0x139   :  { %551 = vrot.lane.b32.xlu1 %v547_v6, %s1746_s7  ;;  %553 = vrot.lane.b32.xlu0 %v548_v13, %s1746_s7  ;;  %v644_v18 = vmul.f32 %v640_v29, %v2028_v30  ;;  %v645_v41 = vmul.f32 %v641_v40, %v2028_v30 }
 0x13b   :  { %v671_v16 = vpop.permute.xlu1 %670  ;;  %v669_v4 = vpop.permute.xlu0 %668 }
 0x13c   :  { %v672_v60 = vsel %vm606_vm8, %v2087_v32, %v669_v4  ;;  %v673_v31 = vsel %vm606_vm8, %v669_v4, %v671_v16  ;;  %v1713_v32 = vunpack.i.h.bf16 %v2098_v35 }
 0x13d   :  { %648 = vrot.lane.b32.xlu1 %v644_v18, %s1745_s21  ;;  %650 = vrot.lane.b32.xlu0 %v645_v41, %s1745_s21  ;;  %v677_v47 = vmul.f32 %v673_v31, %v2050_v56  ;;  %v676_v25 = vmul.f32 %v672_v60, %v2050_v56 }
 0x13f   :  { %v802_v48 = vpop.permute.xlu1 %801  ;;  %v800_v11 = vpop.permute.xlu0 %799 }
 0x140   :  { %v806_v30 = vsel %vm619_vm9, %v802_v48, %v1712_v45  ;;  %v805_v7 = vsel %vm619_vm9, %v800_v11, %v802_v48 }
 0x141   :  { %682 = vrot.lane.b32.xlu1 %v677_v47, %s1745_s21  ;;  %680 = vrot.lane.b32.xlu0 %v676_v25, %s1745_s21  ;;  %v810_v53 = vmul.f32 %v806_v30, %v2048_v55  ;;  %v809_v28 = vmul.f32 %v805_v7, %v2048_v55  ;;  %v1723_v7 = vunpack.i.h.bf16 %v2134_v46 }
 0x143   :  { %v855_v38 = vpop.permute.xlu1 %854  ;;  %v853_v23 = vpop.permute.xlu0 %852 }
 0x144   :  { %v859_v54 = vsel %vm619_vm9, %v855_v38, %v1713_v32  ;;  %v858_v56 = vsel %vm619_vm9, %v853_v23, %v855_v38 }
 0x145   :  { %815 = vrot.lane.b32.xlu1 %v810_v53, %s1744_s9  ;;  %813 = vrot.lane.b32.xlu0 %v809_v28, %s1744_s9  ;;  %v863_v35 = vmul.f32 %v859_v54, %v2068_v15  ;;  %v862_v9 = vmul.f32 %v858_v56, %v2068_v15 }
 0x147   :  { %v967_v58 = vpop.permute.xlu1 %966  ;;  %v965_v55 = vpop.permute.xlu0 %964 }
 0x148   :  { %v971_v59 = vsel %vm490_vm10, %v967_v58, %v1717_v57  ;;  %v970_v61 = vsel %vm490_vm10, %v965_v55, %v967_v58 }
 0x149   :  { %868 = vrot.lane.b32.xlu1 %v863_v35, %s1744_s9  ;;  %866 = vrot.lane.b32.xlu0 %v862_v9, %s1744_s9  ;;  %v975_v0 = vmul.f32 %v971_v59, %v2066_v14  ;;  %v974_v1 = vmul.f32 %v970_v61, %v2066_v14 }
 0x14b   :  { %v906_v27 = vpop.permute.xlu1 %905  ;;  %v908_v2 = vpop.permute.xlu0 %907 }
 0x14c   :  { %v911_v3 = vsel %vm619_vm9, %v906_v27, %v908_v2  ;;  %v912_v15 = vsel %vm619_vm9, %v908_v2, %v2124_v42  ;;  %v1722_v42 = vunpack.i.l.bf16 %v2134_v46 }
 0x14d   :  { %980 = vrot.lane.b32.xlu1 %v975_v0, %s1742_s27  ;;  %978 = vrot.lane.b32.xlu0 %v974_v1, %s1742_s27  ;;  %v916_v17 = vmul.f32 %v912_v15, %v2082_v21  ;;  %v915_v19 = vmul.f32 %v911_v3, %v2082_v21 }
 0x14f   :  { %v999_v26 = vpop.permute.xlu1 %998  ;;  %v997_v14 = vpop.permute.xlu0 %996 }
 0x150   :  { %v1003_v6 = vsel %vm490_vm10, %v999_v26, %v1718_v5  ;;  %v1002_v12 = vsel %vm490_vm10, %v997_v14, %v999_v26  ;;  %v1587_v14 = vld [vmem:[%s2729_s2 + $0x80] sm:$0xff] }
 0x151   :  { %921 = vrot.lane.b32.xlu1 %v916_v17, %s1744_s9  ;;  %919 = vrot.lane.b32.xlu0 %v915_v19, %s1744_s9  ;;  %v1007_v39 = vmul.f32 %v1003_v6, %v2080_v20  ;;  %v1006_v43 = vmul.f32 %v1002_v12, %v2080_v20  ;;  %v1590_v12 = vld [vmem:[%s2729_s2 + $0x98] sm:$0xff] }
 0x153   :  { %v1088_v13 = vpop.permute.xlu1 %1087  ;;  %v1090_v29 = vpop.permute.xlu0 %1089 }
 0x154   :  { %v1093_v21 = vsel %vm367_vm11, %v1088_v13, %v1090_v29  ;;  %v1094_v40 = vsel %vm367_vm11, %v1090_v29, %v1722_v42 }
 0x155   :  { %1012 = vrot.lane.b32.xlu1 %v1007_v39, %s1742_s27  ;;  %1010 = vrot.lane.b32.xlu0 %v1006_v43, %s1742_s27  ;;  %v1098_v18 = vmul.f32 %v1094_v40, %v2091_v33  ;;  %v1097_v41 = vmul.f32 %v1093_v21, %v2091_v33 }
 0x157   :  { %v1031_v16 = vpop.permute.xlu1 %1030  ;;  %v1029_v4 = vpop.permute.xlu0 %1028 }
 0x158   :  { %v1034_v60 = vsel %vm490_vm10, %v1029_v4, %v1031_v16 }
 0x159   :  { %1103 = vrot.lane.b32.xlu1 %v1098_v18, %s1743_s28  ;;  %1101 = vrot.lane.b32.xlu0 %v1097_v41, %s1743_s28  ;;  %v1038_v31 = vmul.f32 %v1034_v60, %v2096_v34 }
 0x15b   :  { %v1209_v20 = vpop.permute.xlu1 %1208  ;;  %v1033_v45 = vpop.permute.xlu0 %1032 }
 0x15c   :  { %v1035_v47 = vsel %vm490_vm10, %v1031_v16, %v1033_v45 }
 0x15d   :  { %v1039_v48 = vmul.f32 %v1035_v47, %v2096_v34  ;;  %1042 = vrot.lane.b32.xlu0 %v1038_v31, %s1742_s27 }
 0x15f   :  { %v1726_v25 = vpop.permute.xlu1 %1725  ;;  %1044 = vrot.lane.b32.xlu1 %v1039_v48, %s1742_s27  ;;  %v1211_v30 = vpop.permute.xlu0 %1210 }
 0x160   :  { %v1727_v33 = vunpack.i.l.bf16 %v1726_v25  ;;  %v1214_v11 = vsel %vm198_vm12, %v1209_v20, %v1211_v30  ;;  %v1728_v56 = vunpack.i.h.bf16 %v1726_v25 }
 0x161   :  { %v1218_v53 = vmul.f32 %v1214_v11, %v2105_v50 }
 0x162   :  { %v1215_v32 = vsel %vm198_vm12, %v1211_v30, %v1727_v33 }
 0x163   :  { %v1219_v38 = vmul.f32 %v1215_v32, %v2105_v50  ;;  %v1122_v28 = vpop.permute.xlu1 %1121  ;;  %1222 = vrot.lane.b32.xlu0 %v1218_v53, %s1741_s22  ;;  %v1120_v54 = vpop.permute.xlu0 %1119 }
 0x164   :  { %v1126_v34 = vsel %vm367_vm11, %v1122_v28, %v1723_v7  ;;  %v1125_v23 = vsel %vm367_vm11, %v1120_v54, %v1122_v28 }
 0x165   :  { %1224 = vrot.lane.b32.xlu1 %v1219_v38, %s1741_s22  ;;  %v1129_v57 = vmul.f32 %v1125_v23, %v2102_v36  ;;  %v1130_v46 = vmul.f32 %v1126_v34, %v2102_v36  ;;  %v2343_v23 = vld [vmem:[#allocation2] sm:$0xff] }
 0x167   :  { %v1243_v35 = vpop.permute.xlu1 %1242  ;;  %1133 = vrot.lane.b32.xlu0 %v1129_v57, %s1743_s28  ;;  %v1241_v50 = vpop.permute.xlu0 %1240 }
 0x168   :  { %v1247_v58 = vsel %vm198_vm12, %v1243_v35, %v1728_v56  ;;  %v1246_v9 = vsel %vm198_vm12, %v1241_v50, %v1243_v35 }
 0x169   :  { %1135 = vrot.lane.b32.xlu1 %v1130_v46, %s1743_s28  ;;  %v1250_v59 = vmul.f32 %v1246_v9, %v2111_v37  ;;  %v1251_v55 = vmul.f32 %v1247_v58, %v2111_v37 }
 0x16b   :  { %v1154_v61 = vpop.permute.xlu1 %1153  ;;  %1254 = vrot.lane.b32.xlu0 %v1250_v59, %s1741_s22  ;;  %v1152_v0 = vpop.permute.xlu0 %1151 }
 0x16c   :  { %v1157_v36 = vsel %vm367_vm11, %v1152_v0, %v1154_v61 }
 0x16d   :  { %1256 = vrot.lane.b32.xlu1 %v1251_v55, %s1741_s22  ;;  %v1161_v27 = vmul.f32 %v1157_v36, %v2126_v44 }
 0x16f   :  { %v1273_v1 = vpop.permute.xlu1 %1272  ;;  %1165 = vrot.lane.b32.xlu0 %v1161_v27, %s1743_s28  ;;  %v1156_v2 = vpop.permute.xlu0 %1155 }
 0x170   :  { %v1158_v3 = vsel %vm367_vm11, %v1154_v61, %v1156_v2 }
 0x171   :  { %v1162_v15 = vmul.f32 %v1158_v3, %v2126_v44  ;;  %v1588_v44 = vld [vmem:[%s2729_s2 + $0x88] sm:$0xff] }
 0x173   :  { %v1277_v5 = vpop.permute.xlu1 %1276  ;;  %1167 = vrot.lane.b32.xlu1 %v1162_v15, %s1743_s28  ;;  %v1275_v37 = vpop.permute.xlu0 %1274 }
 0x174   :  { %v1278_v17 = vsel %vm198_vm12, %v1273_v1, %v1275_v37  ;;  %v1279_v26 = vsel %vm198_vm12, %v1275_v37, %v1277_v5 }
 0x175   :  { %v1282_v19 = vmul.f32 %v1278_v17, %v2142_v49  ;;  %v1283_v6 = vmul.f32 %v1279_v26, %v2142_v49  ;;  %v1589_v49 = vld [vmem:[%s2729_s2 + $0x90] sm:$0xff] }
 0x177   :  { %1288 = vrot.lane.b32.xlu1 %v1283_v6, %s1741_s22  ;;  %1286 = vrot.lane.b32.xlu0 %v1282_v19, %s1741_s22 }
 0x17b   :  { %721 = vperm.xlu1 %1688, %v1588_v44   ;;  %712 = vperm.xlu0 %1687, %v1587_v14  }
 0x17f   :  { %747 = vperm.xlu1 %1688, %v1590_v12   ;;  %734 = vperm.xlu0 %1687, %v1589_v49  }
 0x184   :  { %v336_v42 = vpop.permute.xlu1 %335  ;;  %v146_v39 = vpop.permute.xlu0 %145 }
 0x185   :  { %v149_v41 = vmul.f32 %v146_v39, %v1942_v51  ;;  %v339_v45 = vmul.f32 %v336_v42, %v1942_v51  ;;  %v150_v34 = vmul.f32 %v146_v39, %v1944_v52  ;;  %v148_v56 = vmul.f32 %v2343_v23, %v146_v39 }
 0x186   :  { %v340_v37 = vmul.f32 %v336_v42, %v1944_v52  ;;  %v338_v26 = vmul.f32 %v2343_v23, %v336_v42 }
 0x188   :  { %v2325_v13 = vpop.permute.xlu1 %587  ;;  %v459_v43 = vpop.permute.xlu0 %458 }
 0x189   :  { %v462_v53 = vmul.f32 %v459_v43, %v1942_v51  ;;  %v461_v12 = vmul.f32 %v2343_v23, %v459_v43  ;;  %v463_v39 = vmul.f32 %v459_v43, %v1944_v52 }
 0x18c   :  { %v2327_v29 = vpop.permute.xlu1 %951  ;;  %v2329_v21 = vpop.permute.xlu0 %765 }
 0x190   :  { %v2331_v40 = vpop.permute.xlu1 %1195  ;;  %v2333_v18 = vpop.permute.xlu0 %1074 }
 0x194   :  { %v197_v16 = vpop.permute.xlu1 %196  ;;  %v195_v4 = vpop.permute.xlu0 %194 }
 0x195   :  { %v199_v60 = vsel %vm198_vm12, %v195_v4, %v197_v16  ;;  %v205_v46 = vadd.f32 %v197_v16, %v150_v34  ;;  %v203_v58 = vadd.f32 %v195_v4, %v148_v56 }
 0x196   :  { %v204_v20 = vadd.f32 %v199_v60, %v149_v41 }
 0x198   :  { %v364_v31 = vpop.permute.xlu1 %363  ;;  %v366_v47 = vpop.permute.xlu0 %365 }
 0x199   :  { %v368_v48 = vsel %vm367_vm11, %v364_v31, %v366_v47  ;;  %v374_v6 = vadd.f32 %v366_v47, %v340_v37  ;;  %v372_v14 = vadd.f32 %v364_v31, %v338_v26 }
 0x19a   :  { %v373_v25 = vadd.f32 %v368_v48, %v339_v45 }
 0x19c   :  { %v249_v33 = vpop.permute.xlu1 %248  ;;  %v251_v30 = vpop.permute.xlu0 %250 }
 0x19d   :  { %v252_v11 = vsel %vm198_vm12, %v249_v33, %v251_v30  ;;  %v258_v9 = vadd.f32 %v251_v30, %v205_v46  ;;  %v256_v55 = vadd.f32 %v249_v33, %v203_v58  ;;  %v592_v30 = vmul.f32 %v2325_v13, %v1944_v52 }
 0x19e   :  { %v257_v7 = vadd.f32 %v252_v11, %v204_v20  ;;  %v590_v11 = vmul.f32 %v2343_v23, %v2325_v13 }
 0x1a0   :  { %v487_v32 = vpop.permute.xlu1 %486  ;;  %v489_v38 = vpop.permute.xlu0 %488 }
 0x1a1   :  { %v491_v28 = vsel %vm490_vm10, %v487_v32, %v489_v38  ;;  %v495_v4 = vadd.f32 %v487_v32, %v461_v12  ;;  %v497_v42 = vadd.f32 %v489_v38, %v463_v39  ;;  %v956_v12 = vmul.f32 %v2343_v23, %v2327_v29 }
 0x1a2   :  { %v496_v54 = vadd.f32 %v491_v28, %v462_v53 }
 0x1a4   :  { %v399_v57 = vpop.permute.xlu1 %398  ;;  %v397_v35 = vpop.permute.xlu0 %396 }
 0x1a5   :  { %v400_v50 = vsel %vm367_vm11, %v397_v35, %v399_v57  ;;  %v406_v49 = vadd.f32 %v399_v57, %v374_v6  ;;  %v404_v16 = vadd.f32 %v397_v35, %v372_v14 }
 0x1a6   :  { %v2347_v59 = vadd.f32 %v400_v50, %v373_v25 }
 0x1a8   :  { %v304_v61 = vpop.permute.xlu1 %303  ;;  %v302_v36 = vpop.permute.xlu0 %301 }
 0x1a9   :  { %v311_v0 = vadd.f32 %v304_v61, %v258_v9  ;;  %v305_v27 = vsel %vm198_vm12, %v302_v36, %v304_v61  ;;  %v309_v1 = vadd.f32 %v302_v36, %v256_v55  ;;  %v770_v9 = vmul.f32 %v2343_v23, %v2329_v21 }
 0x1aa   :  { %v2350_v2 = vadd.f32 %v305_v27, %v257_v7  ;;  %v768_v55 = vmul.f32 %v2329_v21, %v1942_v51 }
 0x1ab   :  { %323 = vrot.lane.b32.xlu1 %v311_v0, %s1741_s22  ;;  %319 = vrot.lane.b32.xlu0 %v309_v1, %s1741_s22 }
 0x1ac   :  { %v522_v3 = vpop.permute.xlu1 %521  ;;  %v520_v15 = vpop.permute.xlu0 %519 }
 0x1ad   :  { %v523_v5 = vsel %vm490_vm10, %v520_v15, %v522_v3  ;;  %v527_v47 = vadd.f32 %v520_v15, %v495_v4  ;;  %v529_v31 = vadd.f32 %v522_v3, %v497_v42 }
 0x1ae   :  { %v2356_v17 = vadd.f32 %v523_v5, %v496_v54 }
 0x1b0   :  { %v2359_v19 = vpop.permute.xlu1 %617  ;;  %v2361_v44 = vpop.permute.xlu0 %615 }
 0x1b1   :  { %v626_v32 = vadd.f32 %v2359_v19, %v592_v30  ;;  %v624_v38 = vadd.f32 %v2361_v44, %v590_v11 }
 0x1b4   :  { %v2365_v41 = vpop.permute.xlu1 %430  ;;  %v2368_v20 = vpop.permute.xlu0 %428 }
 0x1b5   :  { %v438_v60 = vadd.f32 %v2365_v41, %v406_v49  ;;  %v436_v45 = vadd.f32 %v2368_v20, %v404_v16  ;;  %v954_v49 = vmul.f32 %v2327_v29, %v1942_v51 }
 0x1b7   :  { %446 = vrot.lane.b32.xlu0 %v438_v60, %s1743_s28  ;;  %442 = vrot.lane.b32.xlu1 %v436_v45, %s1743_s28 }
 0x1b8   :  { %v2373_v48 = vpop.permute.xlu1 %551  ;;  %v2376_v25 = vpop.permute.xlu0 %553 }
 0x1b9   :  { %v559_v43 = vadd.f32 %v2373_v48, %v527_v47  ;;  %v561_v33 = vadd.f32 %v2376_v25, %v529_v31 }
 0x1bb   :  { %569 = vrot.lane.b32.xlu0 %v559_v43, %s1742_s27  ;;  %573 = vrot.lane.b32.xlu1 %v561_v33, %s1742_s27 }
 0x1bc   :  { %v2385_v7 = vpop.permute.xlu1 %648  ;;  %v2388_v53 = vpop.permute.xlu0 %650 }
 0x1bd   :  { %v658_v28 = vadd.f32 %v2388_v53, %v626_v32  ;;  %v656_v34 = vadd.f32 %v2385_v7, %v624_v38  ;;  %v1079_v38 = vmul.f32 %v2343_v23, %v2333_v18 }
 0x1c0   :  { %v2393_v52 = vpop.permute.xlu1 %682  ;;  %v2396_v56 = vpop.permute.xlu0 %680 }
 0x1c1   :  { %v690_v54 = vadd.f32 %v2393_v52, %v658_v28  ;;  %v688_v57 = vadd.f32 %v2396_v56, %v656_v34  ;;  %v2437_v28 = vld [vmem:[#allocation2 + $0x8] sm:$0xff] }
 0x1c2   :  { %v1077_v34 = vmul.f32 %v2437_v28, %v2333_v18 }
 0x1c3   :  { %698 = vrot.lane.b32.xlu0 %v690_v54, %s1744_s9  ;;  %694 = vrot.lane.b32.xlu1 %v688_v57, %s1744_s9 }
 0x1c4   :  { %v2401_v46 = vpop.permute.xlu1 %815  ;;  %v2403_v35 = vpop.permute.xlu0 %813 }
 0x1c5   :  { %v823_v0 = vadd.f32 %v2401_v46, %v770_v9  ;;  %v821_v27 = vadd.f32 %v2403_v35, %v768_v55 }
 0x1c8   :  { %v2405_v58 = vpop.permute.xlu1 %868  ;;  %v2407_v50 = vpop.permute.xlu0 %866 }
 0x1c9   :  { %v876_v1 = vadd.f32 %v2405_v58, %v823_v0  ;;  %v874_v3 = vadd.f32 %v2407_v50, %v821_v27 }
 0x1cc   :  { %v981_v61 = vpop.permute.xlu1 %980  ;;  %v979_v36 = vpop.permute.xlu0 %978 }
 0x1cd   :  { %v988_v16 = vadd.f32 %v981_v61, %v956_v12  ;;  %v986_v60 = vadd.f32 %v979_v36, %v954_v49  ;;  %v432_v12 = vsel %vm367_vm11, %v2368_v20, %v2365_v41  ;;  %v2461_v41 = vld [vmem:[#allocation2 + $0x10] sm:$0xff]  ;;  %v555_v20 = vsel %vm490_vm10, %v2373_v48, %v2376_v25 }
 0x1ce   :  { %v870_v48 = vsel %vm606_vm8, %v2407_v50, %v2405_v58 }
 0x1d0   :  { %v2417_v15 = vpop.permute.xlu1 %921  ;;  %v2420_v37 = vpop.permute.xlu0 %919 }
 0x1d1   :  { %v929_v5 = vadd.f32 %v2417_v15, %v876_v1  ;;  %v927_v26 = vadd.f32 %v2420_v37, %v874_v3 }
 0x1d3   :  { %937 = vrot.lane.b32.xlu1 %v929_v5, %s1745_s21  ;;  %933 = vrot.lane.b32.xlu0 %v927_v26, %s1745_s21  ;;  %v620_v26 = vsel %vm619_vm9, %v2361_v44, %v2359_v19  ;;  %v684_v19 = vsel %vm619_vm9, %v2396_v56, %v2393_v52  ;;  %v982_v44 = vsel %vm477_vm7, %v979_v36, %v981_v61 }
 0x1d4   :  { %v1013_v6 = vpop.permute.xlu1 %1012  ;;  %v1011_v14 = vpop.permute.xlu0 %1010  ;;  %v560_v56 = vadd.f32 %v555_v20, %v2356_v17  ;;  %v1078_v17 = vmul.f32 %v2461_v41, %v2333_v18  ;;  %v26_v20 = vlaneseq }
 0x1d5   :  { %v1020_v42 = vadd.f32 %v1013_v6, %v988_v16  ;;  %v1018_v45 = vadd.f32 %v1011_v14, %v986_v60  ;;  %v591_v16 = vmul.f32 %v2437_v28, %v2325_v13  ;;  %v652_v60 = vsel %vm619_vm9, %v2385_v7, %v2388_v53 }
 0x1d6   :  { %v955_v13 = vmul.f32 %v2461_v41, %v2327_v29  ;;  %v769_v53 = vmul.f32 %v2461_v41, %v2329_v21  ;;  %v1014_v52 = vsel %vm477_vm7, %v1011_v14, %v1013_v6 }
 0x1d8   :  { %v1104_v39 = vpop.permute.xlu1 %1103  ;;  %v1102_v4 = vpop.permute.xlu0 %1101  ;;  %v987_v25 = vadd.f32 %v982_v44, %v955_v13 }
 0x1d9   :  { %v1111_v57 = vadd.f32 %v1104_v39, %v1079_v38  ;;  %v1109_v55 = vadd.f32 %v1102_v4, %v1077_v34  ;;  %v1105_v58 = vsel %vm354_vm6, %v1102_v4, %v1104_v39  ;;  %v1198_v4 = vmul.f32 %v2437_v28, %v2331_v40 }
 0x1da   :  { %v1019_v36 = vadd.f32 %v1014_v52, %v987_v25  ;;  %v1200_v34 = vmul.f32 %v2343_v23, %v2331_v40 }
 0x1dc   :  { %v1045_v47 = vpop.permute.xlu1 %1044  ;;  %v1043_v43 = vpop.permute.xlu0 %1042 }
 0x1dd   :  { %v1052_v31 = vadd.f32 %v1045_v47, %v1020_v42  ;;  %v1050_v33 = vadd.f32 %v1043_v43, %v1018_v45  ;;  %v625_v42 = vadd.f32 %v620_v26, %v591_v16  ;;  %v437_v45 = vadd.f32 %v432_v12, %v2347_v59 }
 0x1de   :  { %v817_v59 = vsel %vm606_vm8, %v2403_v35, %v2401_v46  ;;  %v1046_v46 = vsel %vm477_vm7, %v1043_v43, %v1045_v47  ;;  %v1199_v35 = vmul.f32 %v2461_v41, %v2331_v40  ;;  %v1607_v40 = vld [vmem:[%s2731_s3 + $0x8] sm:$0xff] }
 0x1df   :  { %1060 = vrot.lane.b32.xlu0 %v1052_v31, %s1746_s7  ;;  %1056 = vrot.lane.b32.xlu1 %v1050_v33, %s1746_s7  ;;  %v657_v7 = vadd.f32 %v652_v60, %v625_v42  ;;  %v822_v61 = vadd.f32 %v817_v59, %v769_v53  ;;  %v1051_v31 = vadd.f32 %v1046_v46, %v1019_v36  ;;  %v27_v53 = vand.u32 127, %v26_v20 }
 0x1e0   :  { %v2431_v30 = vpop.permute.xlu1 %1224  ;;  %v2433_v11 = vpop.permute.xlu0 %1222  ;;  %v1110_v33 = vadd.f32 %v1105_v58, %v1078_v17 }
 0x1e1   :  { %v689_v29 = vadd.f32 %v684_v19, %v657_v7  ;;  %v1226_v21 = vsel %vm185_vm5, %v2433_v11, %v2431_v30  ;;  %v875_v14 = vadd.f32 %v870_v48, %v822_v61  ;;  %v28_v48 = vadd.s32 128, %v27_v53 }
 0x1e2   :  { %v1231_v43 = vadd.f32 %v1226_v21, %v1199_v35  ;;  %v29_v61 = vand.u32 15, %v27_v53 }
 0x1e3   :  { %v30_v46 = vand.u32 15, %v28_v48 }
 0x1e4   :  { %v1136_v32 = vpop.permute.xlu1 %1135  ;;  %v1134_v51 = vpop.permute.xlu0 %1133  ;;  %vm2535_vm13 = vcmp.gt.s32.totalorder %v29_v61, 0  ;;  %vm2553_vm15 = vcmp.lt.s32.totalorder %v29_v61, 15 }
 0x1e5   :  { %v1143_v0 = vadd.f32 %v1136_v32, %v1111_v57  ;;  %v1141_v27 = vadd.f32 %v1134_v51, %v1109_v55  ;;  %v1232_v55 = vadd.f32 %v2431_v30, %v1200_v34  ;;  %v1324_v30 = vld [vmem:[%s2731_s3] sm:$0xff]  ;;  %vm2539_vm14 = vcmp.gt.s32.totalorder %v30_v46, 0 }
 0x1e6   :  { %vm2557_vm3 = vcmp.lt.s32.totalorder %v30_v46, 15 }
 0x1e8   :  { %v2441_v54 = vpop.permute.xlu1 %1256  ;;  %v1255_v9 = vpop.permute.xlu0 %1254 }
 0x1e9   :  { %v1258_v47 = vsel %vm185_vm5, %v1255_v9, %v2441_v54 }
 0x1ea   :  { %v1263_v38 = vadd.f32 %v1258_v47, %v1231_v43 }
 0x1ec   :  { %v1168_v1 = vpop.permute.xlu1 %1167  ;;  %v1166_v5 = vpop.permute.xlu0 %1165 }
 0x1ed   :  { %v1175_v3 = vadd.f32 %v1168_v1, %v1143_v0  ;;  %v1173_v49 = vadd.f32 %v1166_v5, %v1141_v27  ;;  %v1169_v18 = vsel %vm354_vm6, %v1166_v5, %v1168_v1 }
 0x1ef   :  { %1183 = vrot.lane.b32.xlu1 %v1175_v3, %s1747_s1  ;;  %1179 = vrot.lane.b32.xlu0 %v1173_v49, %s1747_s1  ;;  %v1264_v3 = vadd.f32 %v2441_v54, %v1232_v55  ;;  %v1608_v54 = vld [vmem:[%s2731_s3 + $0x10] sm:$0xff] }
 0x1f0   :  { %v1289_v50 = vpop.permute.xlu1 %1288  ;;  %v1287_v6 = vpop.permute.xlu0 %1286 }
 0x1f1   :  { %v1290_v39 = vsel %vm185_vm5, %v1287_v6, %v1289_v50  ;;  %v1296_v5 = vadd.f32 %v1289_v50, %v1264_v3 }
 0x1f3   :  { %444 = vrot.lane.b32.xlu1 %v437_v45, %s1743_s28  ;;  %321 = vrot.lane.b32.xlu0 %v2350_v2, %s1741_s22  ;;  %v923_v2 = vsel %vm606_vm8, %v2420_v37, %v2417_v15  ;;  %v1137_v15 = vsel %vm354_vm6, %v1134_v51, %v1136_v32  ;;  %v1230_v32 = vadd.f32 %v2433_v11, %v1198_v4  ;;  %v1609_v11 = vld [vmem:[%s2731_s3 + $0x18] sm:$0xff] }
 0x1f4   :  { %v928_v37 = vadd.f32 %v923_v2, %v875_v14  ;;  %v1142_v57 = vadd.f32 %v1137_v15, %v1110_v33  ;;  %v1295_v51 = vadd.f32 %v1290_v39, %v1263_v38 }
 0x1f5   :  { %v1262_v27 = vadd.f32 %v1255_v9, %v1230_v32 }
 0x1f6   :  { %v1174_v0 = vadd.f32 %v1169_v18, %v1142_v57 }
 0x1f7   :  { %696 = vrot.lane.b32.xlu1 %v689_v29, %s1744_s9  ;;  %571 = vrot.lane.b32.xlu0 %v560_v56, %s1742_s27  ;;  %v1294_v1 = vadd.f32 %v1287_v6, %v1262_v27 }
 0x1fa   :  { %v722_v9 = vpop.permute.xlu1 %721  ;;  %v713_v26 = vpop.permute.xlu0 %712 }
 0x1fb   :  { %1058 = vrot.lane.b32.xlu1 %v1051_v31, %s1746_s7  ;;  %935 = vrot.lane.b32.xlu0 %v928_v37, %s1745_s21  ;;  %v726_v35 = vmul.f32 %v722_v9, %v1956_v63  ;;  %v727_v2 = vmul.f32 %v722_v9, %v1951_v62  ;;  %v715_v36 = vmul.f32 %v2437_v28, %v713_v26 }
 0x1fc   :  { %v716_v58 = vmul.f32 %v2461_v41, %v713_v26 }
 0x1fd   :  { %v728_v43 = vadd.f32 %v726_v35, %v715_v36 }
 0x1fe   :  { %v748_v12 = vpop.permute.xlu1 %747  ;;  %v735_v49 = vpop.permute.xlu0 %734  ;;  %v729_v15 = vadd.f32 %v727_v2, %v716_v58 }
 0x1ff   :  { %1302 = vrot.lane.b32.xlu1 %v1295_v51, %s1748_s25  ;;  %1181 = vrot.lane.b32.xlu0 %v1174_v0, %s1747_s1  ;;  %v739_v14 = vmul.f32 %v735_v49, %v1965_v8  ;;  %v740_v47 = vmul.f32 %v735_v49, %v1972_v10 }
 0x201   :  { %v741_v4 = vadd.f32 %v739_v14, %v728_v43  ;;  %v742_v38 = vadd.f32 %v740_v47, %v729_v15 }
 0x203   :  { %1300 = vrot.lane.b32.xlu1 %v1294_v1, %s1748_s25  ;;  %1304 = vrot.lane.b32.xlu0 %v1296_v5, %s1748_s25  ;;  %v752_v1 = vmul.f32 %v748_v12, %v1991_v22  ;;  %v753_v5 = vmul.f32 %v748_v12, %v1998_v24 }
 0x205   :  { %v754_v49 = vadd.f32 %v752_v1, %v741_v4 }
 0x207   :  { %1342 = vperm.xlu1 %1688, %v1607_v40   ;;  %1327 = vperm.xlu0 %1687, %v1324_v30  }
 0x20b   :  { %1396 = vperm.xlu1 %1688, %v1609_v11   ;;  %1369 = vperm.xlu0 %1687, %v1608_v54  }
 0x20f   :  { %1429 = vrot.lane.b32.xlu1 %v2343_v23, %s1745_s21 }
 0x21d   :  { %v324_v16 = vpop.permute.xlu1 %323  ;;  %v320_v60 = vpop.permute.xlu0 %319 }
 0x229   :  { %v443_v42 = vpop.permute.xlu1 %442  ;;  %v447_v45 = vpop.permute.xlu0 %446 }
 0x22d   :  { %v574_v19 = vpop.permute.xlu1 %573  ;;  %v570_v44 = vpop.permute.xlu0 %569 }
 0x235   :  { %v695_v13 = vpop.permute.xlu1 %694  ;;  %v699_v7 = vpop.permute.xlu0 %698 }
 0x245   :  { %v938_v59 = vpop.permute.xlu1 %937  ;;  %v934_v52 = vpop.permute.xlu0 %933 }
 0x251   :  { %v1057_v29 = vpop.permute.xlu1 %1056  ;;  %v1061_v25 = vpop.permute.xlu0 %1060 }
 0x261   :  { %v2527_v56 = vpop.permute.xlu1 %1183  ;;  %v2529_v21 = vpop.permute.xlu0 %1179 }
 0x265   :  { %v445_v50 = vpop.permute.xlu1 %444  ;;  %v322_v63 = vpop.permute.xlu0 %321 }
 0x266   :  { %v448_v62 = vsel %vm354_vm6, %v443_v42, %v445_v50  ;;  %v449_v28 = vsel %vm354_vm6, %v445_v50, %v447_v45  ;;  %v325_v41 = vsel %vm185_vm5, %v320_v60, %v322_v63  ;;  %v326_v31 = vsel %vm185_vm5, %v322_v63, %v324_v16 }
 0x267   :  { %v329_v37 = vsel %vm2535_vm13, %v325_v41, 0.0  ;;  %v330_v33 = vsel %vm2539_vm14, %v326_v31, 0.0  ;;  %v755_v16 = vadd.f32 %v753_v5, %v742_v38 }
 0x268   :  { %v452_v18 = vadd.f32 %v448_v62, %v329_v37  ;;  %v453_v34 = vadd.f32 %v449_v28, %v330_v33 }
 0x269   :  { %v697_v8 = vpop.permute.xlu1 %696  ;;  %v572_v57 = vpop.permute.xlu0 %571 }
 0x26a   :  { %v700_v32 = vsel %vm606_vm8, %v695_v13, %v697_v8  ;;  %v701_v51 = vsel %vm606_vm8, %v697_v8, %v699_v7  ;;  %v575_v55 = vsel %vm477_vm7, %v570_v44, %v572_v57  ;;  %v576_v0 = vsel %vm477_vm7, %v572_v57, %v574_v19 }
 0x26b   :  { %v579_v27 = vsel %vm2553_vm15, %v575_v55, 0.0  ;;  %v580_v3 = vsel %vm2557_vm3, %v576_v0, 0.0  ;;  %v704_v54 = vsel %vm2535_vm13, %v700_v32, 0.0  ;;  %v705_v9 = vsel %vm2539_vm14, %v701_v51, 0.0 }
 0x26c   :  { %v581_v40 = vadd.f32 %v579_v27, %v452_v18  ;;  %v582_v30 = vadd.f32 %v580_v3, %v453_v34 }
 0x26d   :  { %v1059_v11 = vpop.permute.xlu1 %1058  ;;  %v936_v26 = vpop.permute.xlu0 %935 }
 0x26e   :  { %v706_v60 = vadd.f32 %v704_v54, %v581_v40  ;;  %v707_v42 = vadd.f32 %v705_v9, %v582_v30  ;;  %v939_v45 = vsel %vm619_vm9, %v934_v52, %v936_v26  ;;  %v940_v22 = vsel %vm619_vm9, %v936_v26, %v938_v59  ;;  %v1737_v30 = vld [vmem:[%s2730_s0] sm:$0xff]  ;;  %v1738_v54 = vld [vmem:[%s2730_s0 + $0x8] sm:$0xff] }
 0x26f   :  { %v1062_v24 = vsel %vm490_vm10, %v1057_v29, %v1059_v11  ;;  %v1063_v12 = vsel %vm490_vm10, %v1059_v11, %v1061_v25  ;;  %v943_v20 = vsel %vm2553_vm15, %v939_v45, 0.0  ;;  %v944_v7 = vsel %vm2557_vm3, %v940_v22, 0.0 }
 0x270   :  { %v756_v19 = vadd.f32 %v754_v49, %v706_v60  ;;  %v757_v44 = vadd.f32 %v755_v16, %v707_v42  ;;  %v1066_v52 = vsel %vm2535_vm13, %v1062_v24, 0.0  ;;  %v1067_v59 = vsel %vm2539_vm14, %v1063_v12, 0.0 }
 0x271   :  { %v1303_v13 = vpop.permute.xlu1 %1302  ;;  %v1182_v53 = vpop.permute.xlu0 %1181 }
 0x272   :  { %v945_v48 = vadd.f32 %v943_v20, %v756_v19  ;;  %v946_v61 = vadd.f32 %v944_v7, %v757_v44  ;;  %v1185_v35 = vsel %vm367_vm11, %v2529_v21, %v1182_v53  ;;  %v1186_v2 = vsel %vm367_vm11, %v1182_v53, %v2527_v56 }
 0x274   :  { %v1068_v29 = vadd.f32 %v1066_v52, %v945_v48  ;;  %v1069_v25 = vadd.f32 %v1067_v59, %v946_v61 }
 0x275   :  { %v1301_v46 = vpop.permute.xlu1 %1300  ;;  %v1305_v58 = vpop.permute.xlu0 %1304 }
 0x276   :  { %v1306_v36 = vsel %vm198_vm12, %v1301_v46, %v1303_v13  ;;  %v1189_v50 = vadd.f32 %v1185_v35, %v1068_v29  ;;  %v1190_v14 = vadd.f32 %v1186_v2, %v1069_v25  ;;  %v1307_v17 = vsel %vm198_vm12, %v1303_v13, %v1305_v58  ;;  %v1473_v35 = vld [vmem:[%s2732_s4 + $0x80] sm:$0xff]  ;;  %v1474_v2 = vld [vmem:[%s2732_s4 + $0x88] sm:$0xff] }
 0x277   :  { %v1310_v6 = vsel %vm2553_vm15, %v1306_v36, 0.0  ;;  %v1311_v47 = vsel %vm2557_vm3, %v1307_v17, 0.0  ;;  %v1457_v36 = vld [vmem:[%s2732_s4] sm:$0xff]  ;;  %v1458_v17 = vld [vmem:[%s2732_s4 + $0x8] sm:$0xff] }
 0x278   :  { %v1312_v63 = vadd.f32 %v1310_v6, %v1189_v50  ;;  %v1313_v62 = vadd.f32 %v1311_v47, %v1190_v14  ;;  %v1645_v6 = vpack.c.bf16 %v1474_v2, %v1473_v35  ;;  %v1475_v47 = vld [vmem:[%s2732_s4 + $0x90] sm:$0xff] }
 0x27a   :  { %vm1314_vm4 = vcmp.gt.f32.partialorder %v1312_v63, 0.0  ;;  %v1316_v21 = vmul.f32 0.2, %v1312_v63  ;;  %vm1315_vm5 = vcmp.gt.f32.partialorder %v1313_v62, 0.0  ;;  %v1317_v28 = vmul.f32 0.2, %v1313_v62  ;;  %1646 = vmatprep.subr.bf16.mxu0 %v1645_v6 }
 0x27c   :  { %v1318_v56 = vsel %vm1314_vm4, %v1312_v63, %v1316_v21  ;;  %v1319_v41 = vsel %vm1315_vm5, %v1313_v62, %v1317_v28  ;;  %v1476_v63 = vld [vmem:[%s2732_s4 + $0x98] sm:$0xff]  ;;  %v1647_v62 = vpack.c.bf16 %v1458_v17, %v1457_v36  ;;  %v1459_v28 = vld [vmem:[%s2732_s4 + $0x10] sm:$0xff] }
 0x27d   :  { %1320 = vst [vmem:[#allocation2 + $0x8] sm:$0xff] %v1318_v56  ;;  %1322 = vst [vmem:[#allocation2 + $0x28] sm:$0xff] %v1318_v56  ;;  %v1649_v21 = vpack.c.bf16 %v1476_v63, %v1475_v47 }
 0x27e   :  { %1321 = vst [vmem:[#allocation2 + $0x10] sm:$0xff] %v1319_v41  ;;  %1323 = vst [vmem:[#allocation2 + $0x30] sm:$0xff] %v1319_v41  ;;  %1648 = vmatpush3.bf16.msra.mxu0 %v1647_v62 }
 0x27f   :  { %1650 = vmatprep.subr.bf16.mxu0 %v1649_v21 }
 0x284   :  { %v1336_v31 = vld [vmem:[#allocation2 + $0x8] sm:$0xfc]  ;;  %v1338_v15 = vld [vmem:[#allocation2 + $0x28] sm:$0x3] }
 0x285   :  { %v1337_v43 = vld [vmem:[#allocation2 + $0x10] sm:$0xfc]  ;;  %v1339_v33 = vld [vmem:[#allocation2 + $0x30] sm:$0x3]  ;;  %v1349_v8 = vrot.slane %v1336_v31, 2  ;;  %v1350_v10 = vrot.slane %v1338_v15, 2 }
 0x286   :  { %v1343_v37 = vpop.permute.xlu1 %1342  ;;  %v1352_v39 = vrot.slane %v1337_v43, 2  ;;  %v1353_v4 = vrot.slane %v1339_v33, 2  ;;  %v1328_v38 = vpop.permute.xlu0 %1327  ;;  %v1390_v18 = vld [vmem:[#allocation2 + $0x8] sm:$0xc0]  ;;  %v1391_v51 = vld [vmem:[#allocation2 + $0x10] sm:$0xc0] }
 0x287   :  { %v1351_v34 = vsel %vm60_vm0, %v1349_v8, %v1350_v10  ;;  %v1330_v57 = vmul.f32 %v1328_v38, %v1318_v56  ;;  %v1331_v32 = vmul.f32 %v1328_v38, %v1319_v41  ;;  %v1392_v55 = vld [vmem:[#allocation2 + $0x28] sm:$0x3f]  ;;  %v1393_v3 = vld [vmem:[#allocation2 + $0x30] sm:$0x3f]  ;;  %v1403_v26 = vrot.slane %v1390_v18, 6  ;;  %v1460_v56 = vld [vmem:[%s2732_s4 + $0x18] sm:$0xff] }
 0x288   :  { %v1354_v0 = vsel %vm60_vm0, %v1352_v39, %v1353_v4  ;;  %v1357_v27 = vmul.f32 %v1351_v34, %v1343_v37  ;;  %v1363_v1 = vld [vmem:[#allocation2 + $0x8] sm:$0xf0]  ;;  %v1364_v5 = vld [vmem:[#allocation2 + $0x10] sm:$0xf0]  ;;  %v1365_v49 = vld [vmem:[#allocation2 + $0x28] sm:$0xf]  ;;  %v1651_v15 = vpack.c.bf16 %v1460_v56, %v1459_v28 }
 0x289   :  { %v1358_v40 = vmul.f32 %v1354_v0, %v1343_v37  ;;  %v1332_v11 = vadd.f32 %v1737_v30, %v1330_v57  ;;  %v1333_v9 = vadd.f32 %v1738_v54, %v1331_v32  ;;  %v1366_v16 = vld [vmem:[#allocation2 + $0x30] sm:$0xf]  ;;  %v1404_v60 = vrot.slane %v1392_v55, 6  ;;  %v1477_v41 = vld [vmem:[%s2732_s4 + $0xa0] sm:$0xff]  ;;  %v1478_v43 = vld [vmem:[%s2732_s4 + $0xa8] sm:$0xff] }
 0x28a   :  { %v1376_v42 = vrot.slane %v1363_v1, 4  ;;  %v1377_v45 = vrot.slane %v1365_v49, 4  ;;  %v1379_v22 = vrot.slane %v1364_v5, 4  ;;  %v1370_v24 = vpop.permute.xlu0 %1369  ;;  %v1397_v19 = vpop.permute.xlu1 %1396  ;;  %v1406_v44 = vrot.slane %v1391_v51, 6  ;;  %v1461_v33 = vld [vmem:[%s2732_s4 + $0x20] sm:$0xff]  ;;  %v1462_v8 = vld [vmem:[%s2732_s4 + $0x28] sm:$0xff]  ;;  %1652 = vmatpush3.bf16.msra.mxu0 %v1651_v15 }
 0x28b   :  { %v1359_v12 = vadd.f32 %v1357_v27, %v1332_v11  ;;  %v1407_v13 = vrot.slane %v1393_v3, 6  ;;  %v1380_v7 = vrot.slane %v1366_v16, 4  ;;  %v1360_v53 = vadd.f32 %v1358_v40, %v1333_v9  ;;  %v1479_v10 = vld [vmem:[%s2732_s4 + $0xb0] sm:$0xff]  ;;  %v1480_v39 = vld [vmem:[%s2732_s4 + $0xb8] sm:$0xff]  ;;  %v1481_v57 = vld [vmem:[%s2732_s4 + $0xc0] sm:$0xff] }
 0x28c   :  { %v1378_v20 = vsel %vm88_vm1, %v1376_v42, %v1377_v45  ;;  %v1405_v61 = vsel %vm116_vm2, %v1403_v26, %v1404_v60  ;;  %v1653_v37 = vpack.c.bf16 %v1478_v43, %v1477_v41  ;;  %v1655_v4 = vpack.c.bf16 %v1462_v8, %v1461_v33  ;;  %v1463_v18 = vld [vmem:[%s2732_s4 + $0x30] sm:$0xff]  ;;  %v1464_v34 = vld [vmem:[%s2732_s4 + $0x38] sm:$0xff]  ;;  %v1482_v32 = vld [vmem:[%s2732_s4 + $0xc8] sm:$0xff] }
 0x28d   :  { %v1384_v48 = vmul.f32 %v1378_v20, %v1370_v24  ;;  %v1381_v52 = vsel %vm88_vm1, %v1379_v22, %v1380_v7  ;;  %v1411_v59 = vmul.f32 %v1405_v61, %v1397_v19  ;;  %v1408_v46 = vsel %vm116_vm2, %v1406_v44, %v1407_v13  ;;  %v1465_v0 = vld [vmem:[%s2732_s4 + $0x40] sm:$0xff]  ;;  %v1466_v27 = vld [vmem:[%s2732_s4 + $0x48] sm:$0xff]  ;;  %v1483_v3 = vld [vmem:[%s2732_s4 + $0xd0] sm:$0xff] }
 0x28e   :  { %v1385_v29 = vmul.f32 %v1381_v52, %v1370_v24  ;;  %v1412_v58 = vmul.f32 %v1408_v46, %v1397_v19  ;;  %1654 = vmatprep.subr.bf16.mxu0 %v1653_v37  ;;  %v1657_v38 = vpack.c.bf16 %v1480_v39, %v1479_v10  ;;  %v1659_v51 = vpack.c.bf16 %v1464_v34, %v1463_v18  ;;  %v1484_v1 = vld [vmem:[%s2732_s4 + $0xd8] sm:$0xff]  ;;  %v1467_v30 = vld [vmem:[%s2732_s4 + $0x50] sm:$0xff]  ;;  %v1485_v54 = vld [vmem:[%s2732_s4 + $0xe0] sm:$0xff]  ;;  %v1430_v44 = vpop.permute.xlu1 %1429 }
 0x28f   :  { %v1386_v25 = vadd.f32 %v1384_v48, %v1359_v12  ;;  %1656 = vmatpush3.bf16.msra.mxu0 %v1655_v4  ;;  %v1661_v55 = vpack.c.bf16 %v1482_v32, %v1481_v57  ;;  %v1663_v5 = vpack.c.bf16 %v1466_v27, %v1465_v0  ;;  %v1665_v40 = vpack.c.bf16 %v1484_v1, %v1483_v3  ;;  %v1468_v11 = vld [vmem:[%s2732_s4 + $0x58] sm:$0xff]  ;;  %v1486_v9 = vld [vmem:[%s2732_s4 + $0xe8] sm:$0xff]  ;;  %v1469_v16 = vld [vmem:[%s2732_s4 + $0x60] sm:$0xff] }
 0x290   :  { %v1387_v50 = vadd.f32 %v1385_v29, %v1360_v53  ;;  %1658 = vmatprep.subr.bf16.mxu0 %v1657_v38  ;;  %v1667_v26 = vpack.c.bf16 %v1468_v11, %v1467_v30  ;;  %v1669_v49 = vpack.c.bf16 %v1486_v9, %v1485_v54  ;;  %v1470_v60 = vld [vmem:[%s2732_s4 + $0x68] sm:$0xff]  ;;  %v1487_v45 = vld [vmem:[%s2732_s4 + $0xf0] sm:$0xff]  ;;  %v1488_v22 = vld [vmem:[%s2732_s4 + $0xf8] sm:$0xff]  ;;  %vm1559_vm0 = vcmask 523264  }
 0x291   :  { %v2618_v14 = vadd.f32 %v1411_v59, %v1386_v25  ;;  %v1671_v42 = vpack.c.bf16 %v1470_v60, %v1469_v16  ;;  %v1471_v24 = vld [vmem:[%s2732_s4 + $0x70] sm:$0xff]  ;;  %v1673_v12 = vpack.c.bf16 %v1488_v22, %v1487_v45  ;;  %v1472_v19 = vld [vmem:[%s2732_s4 + $0x78] sm:$0xff] }
 0x292   :  { %v1414_v31 = vadd.f32 %v1412_v58, %v1387_v50  ;;  %v1675_v13 = vpack.c.bf16 %v1472_v19, %v1471_v24 }
 0x293   :  { %1415 = vst [vmem:[%s2733_s5] sm:$0xff] %v2618_v14  ;;  %1660 = vmatpush3.bf16.msra.mxu0 %v1659_v51 }
 0x294   :  { %1416 = vst [vmem:[%s2733_s5 + $0x8] sm:$0xff] %v1414_v31  ;;  %1427 = vrot.lane.b32.xlu0 %v1414_v31, %s1745_s21  ;;  %1662 = vmatprep.subr.bf16.mxu0 %v1661_v55 }
 0x297   :  { %1664 = vmatpush3.bf16.msra.mxu0 %v1663_v5 }
 0x298   :  { %1425 = vrot.lane.b32.xlu0 %v2618_v14, %s1745_s21  ;;  %1666 = vmatprep.subr.bf16.mxu0 %v1665_v40 }
 0x29b   :  { %1668 = vmatpush3.bf16.msra.mxu0 %v1667_v26 }
 0x29c   :  { %1670 = vmatprep.subr.bf16.mxu0 %v1669_v49 }
 0x29f   :  { %1672 = vmatpush3.bf16.msra.mxu0 %v1671_v42 }
 0x2a0   :  { %1674 = vmatprep.subr.bf16.mxu0 %v1673_v12 }
 0x2a3   :  { %1676 = vmatpush3.bf16.msra.mxu0 %v1675_v13 }
 0x306   :  { %v1428_v20 = vpop.permute.xlu0 %1427 }
 0x307   :  { %v1432_v7 = vsel %vm619_vm9, %v1428_v20, %v1430_v44 }
 0x308   :  { %v1436_v53 = vmax.f32 %v1414_v31, %v1432_v7 }
 0x30a   :  { %1438 = vst [vmem:[#allocation2 + $0x10] sm:$0xff] %v1436_v53  ;;  %v1426_v48 = vpop.permute.xlu0 %1425  ;;  %v1729_v61 = vpack.i.bf16 %v2343_v23, %v1436_v53 }
 0x30b   :  { %v1431_v52 = vsel %vm619_vm9, %v1426_v48, %v1428_v20 }
 0x30c   :  { %v1435_v59 = vmax.f32 %v2618_v14, %v1431_v52  ;;  %1730 = vrot.lane.b32.xlu1 %v1729_v61, %s1747_s1 }
 0x30e   :  { %1437 = vst [vmem:[#allocation2 + $0x8] sm:$0xff] %v1435_v59  ;;  %1445 = vrot.lane.b32.xlu0 %v1435_v59, %s1747_s1 }
 0x37e   :  { %v1731_v29 = vpop.permute.xlu1 %1730 }
 0x37f   :  { %v1733_v25 = vunpack.i.h.bf16 %v1731_v29  ;;  %v1732_v46 = vunpack.i.l.bf16 %v1731_v29 }
 0x380   :  { %v1446_v35 = vpop.permute.xlu0 %1445 }
 0x381   :  { %v1451_v2 = vsel %vm367_vm11, %v1446_v35, %v1732_v46  ;;  %v1452_v36 = vsel %vm367_vm11, %v1732_v46, %v1733_v25 }
 0x382   :  { %v1455_v58 = vmax.f32 %v1435_v59, %v1451_v2  ;;  %v1456_v50 = vmax.f32 %v1436_v53, %v1452_v36 }
 0x384   :  { %1553 = vmatprep.mubr.f32.mxu0 %v1456_v50 }
 0x385   :  { %1554 = vmatmul.mubr.f32.vlgmr.msra.gmra.mrb[0].mxu0 %v1455_v58 }
 0x458   :  { %v1642_v23 = vpop.f32.mrb[0].mxu0 }
 0x459   :  { %v1643_v6 = vpop.f32.mrb[1].mxu0 }
 0x45a   :  { %v1644_v14 = vadd.f32 %v1643_v6, %v1642_v23 }
 0x45c   :  { %1560 = vst.msk [vmem:[%s2734_s6] sm:$0xff] %vm1559_vm0, %v1644_v14 }

</bundles_post_ra>
